<compile_context>
chip_gen: v6e
topology: v6e:2x2x1
jax: 0.10.0
libtpu: 0.0.40
codegen_flags: <defaults>
</compile_context>

<pallas_src>
import functools

import jax
import jax.numpy as jnp
import numpy as np
from jax import lax
from jax.experimental import pallas as pl
from jax.experimental.pallas import tpu as pltpu


def _gelu_tanh(x):
    # PyTorch GELU(approximate='tanh')
    c = 0.7978845608028654  # sqrt(2/pi)
    return 0.5 * x * (1.0 + jnp.tanh(c * (x + 0.044715 * x * x * x)))


def _shift_next(t):
    # out[..., j] = t[..., j+1] (circular; the wrapped lane is masked by a zeroed sin table)
    d = t.shape[-1]
    if d % 128 == 0:
        return pltpu.roll(t, d - 1, axis=t.ndim - 1)  # XLU lane rotate (real model D=128)
    return jnp.concatenate([t[..., 1:], t[..., :1]], axis=-1)  # fallback for tiny test D


def _shift_prev(t):
    # out[..., j] = t[..., j-1]
    d = t.shape[-1]
    if d % 128 == 0:
        return pltpu.roll(t, 1, axis=t.ndim - 1)
    return jnp.concatenate([t[..., -1:], t[..., :-1]], axis=-1)


# --------------------------- Kernel A: LN + linear1 + qk/rope + mlp@W2b ---------------------------
def _qkv_mlp_kernel(x_ref, shift_ref, scale_ref, w1_ref, b1_ref, qw_ref, kw_ref,
                    cos_ref, sina_ref, sinb_ref, w2b_ref,
                    q_ref, k_ref, v_ref, mlpo_ref, *, hidden_size, num_heads):
    Hs = hidden_size
    H = num_heads
    D = Hs // H
    attn_scale = D ** (-0.5)

    x = x_ref[0]          # (TL, Hs) f32
    shift = shift_ref[0]  # (1, Hs)
    scale = scale_ref[0]  # (1, Hs)

    # pre-norm (LayerNorm, no affine, eps=1e-6) + modulate
    mean = jnp.mean(x, axis=-1, keepdims=True)
    xc = x - mean
    var = jnp.mean(xc * xc, axis=-1, keepdims=True)
    x_mod = (xc * lax.rsqrt(var + 1e-6)) * (1.0 + scale) + shift

    # linear1: bf16 operands on the MXU, f32 accumulation
    h = jnp.dot(x_mod.astype(jnp.bfloat16), w1_ref[...],
                preferred_element_type=jnp.float32) + b1_ref[...]   # (TL, 3Hs+Mh) f32

    cos = cos_ref[...]     # (TL, D)
    sin_a = sina_ref[...]  # -sin at even lanes, 0 at odd lanes (multiplies t[j+1])
    sin_b = sinb_ref[...]  # +sin at odd lanes, 0 at even lanes (multiplies t[j-1])
    qw = qw_ref[...]       # (1, D)
    kw = kw_ref[...]

    def rms_rot(t, w):
        # RMSNorm(head_dim, eps=1e-6, affine) followed by interleaved-pair rotary.
        t = t * lax.rsqrt(jnp.mean(t * t, axis=-1, keepdims=True) + 1e-6) * w
        return t * cos + _shift_next(t) * sin_a + _shift_prev(t) * sin_b

    # Per-head q/k norm + rotary.  Store-only unrolled loop: each head's slice is produced
    # and written immediately into the head-major output block (no concat, O(1) live data).
    for hd in range(H):
        q_h = rms_rot(h[:, hd * D:(hd + 1) * D], qw) * attn_scale  # fold 1/sqrt(D) here
        k_h = rms_rot(h[:, Hs + hd * D:Hs + (hd + 1) * D], kw)
        v_h = h[:, 2 * Hs + hd * D:2 * Hs + (hd + 1) * D]
        q_ref[0, hd] = q_h.astype(q_ref.dtype)
        k_ref[0, hd] = k_h.astype(k_ref.dtype)
        v_ref[0, hd] = v_h.astype(v_ref.dtype)

    # MLP half of linear2 (split-linear2): gelu_tanh(mlp) @ W2[Hs:, :]
    mlp = h[:, 3 * Hs:]
    mlpo_ref[0] = jnp.dot(_gelu_tanh(mlp).astype(jnp.bfloat16), w2b_ref[...],
                          preferred_element_type=jnp.float32)


# ------------------ Kernel B: flash attention + attn@W2a + bias + gated residual ------------------
def _attn_out_kernel(q_ref, k_ref, v_ref, x_ref, mlpo_ref, w2a_ref, b2_ref, gate_ref,
                     o_ref, m_ref, l_ref, acc_ref, *, hidden_size, num_heads):
    Hs = hidden_size
    H = num_heads
    D = Hs // H
    ki = pl.program_id(2)

    @pl.when(ki == 0)
    def _():
        m_ref[...] = jnp.full(m_ref.shape, -jnp.inf, m_ref.dtype)
        l_ref[...] = jnp.zeros(l_ref.shape, l_ref.dtype)
        acc_ref[...] = jnp.zeros(acc_ref.shape, acc_ref.dtype)

    q = q_ref[0]   # (H, TQ, D) bf16, already scaled by D**-0.5
    k = k_ref[0]   # (H, TKV, D) bf16
    v = v_ref[0]   # (H, TKV, D) bf16

    # all heads at once; f32 accumulation on the MXU
    s = lax.dot_general(q, k, (((2,), (2,)), ((0,), (0,))),
                        preferred_element_type=jnp.float32)        # (H, TQ, TKV)

    m_prev = m_ref[...]
    m_new = jnp.maximum(m_prev, jnp.max(s, axis=-1, keepdims=True))
    alpha = jnp.exp(m_prev - m_new)
    p = jnp.exp(s - m_new)
    l_ref[...] = alpha * l_ref[...] + jnp.sum(p, axis=-1, keepdims=True)
    acc_ref[...] = alpha * acc_ref[...] + lax.dot_general(
        p.astype(v.dtype), v, (((2,), (1,)), ((0,), (0,))),
        preferred_element_type=jnp.float32)                        # (H, TQ, D)
    m_ref[...] = m_new

    @pl.when(ki == pl.num_programs(2) - 1)
    def _():
        inv_l = pl.reciprocal(l_ref[...], approx=True)             # EUP, (H, TQ, 1)
        out = mlpo_ref[0] + b2_ref[...]                            # (TQ, Hs) f32
        # attention half of linear2, split per head: sum_h attn_h @ W2a[h*D:(h+1)*D, :]
        # (no (TQ, Hs) head concat, no (TQ, Hs+Mh) concat)
        for hd in range(H):
            attn_h = (acc_ref[hd] * inv_l[hd]).astype(jnp.bfloat16)        # (TQ, D)
            out = out + jnp.dot(attn_h, w2a_ref[hd * D:(hd + 1) * D, :],
                                preferred_element_type=jnp.float32)
        o_ref[0] = (x_ref[0] + out * gate_ref[0]).astype(o_ref.dtype)


# ----------------------------------------- wrapper -----------------------------------------
def mm_single_stream_block(x, vec, params, cos_tab, sin_tab, *, hidden_size, num_heads,
                           tile_l=16, tile_q=16, tile_kv=16):
    B, L, Hs = x.shape
    assert Hs == hidden_size
    H = num_heads
    D = Hs // H
    Mh = params['w2'].shape[0] - Hs
    W1N = 3 * Hs + Mh
    assert params['w1'].shape == (Hs, W1N)
    assert L % tile_l == 0 and L % tile_q == 0 and L % tile_kv == 0
    f32, bf16 = jnp.float32, jnp.bfloat16
    # NOTE(v7x): tiles here are sized for the tiny test; for production (Hs=3072, D=128,
    # L ~ tens of thousands) pick tile_l/tile_q/tile_kv of 128-512 against a 64 MiB VMEM
    # budget and stream w1 over an extra K/N grid axis.

    # --- modulation in plain XLA (tiny M=1 matmul; keeps w_mod out of kernel VMEM) ---
    silu = vec * jax.nn.sigmoid(vec)
    mod = jnp.dot(silu, params['w_mod']) + params['b_mod'][0]
    shift, scale, gate = jnp.split(mod, 3, axis=-1)
    shift = shift[:, None, :].astype(f32)   # (B, 1, Hs)
    scale = scale[:, None, :].astype(f32)
    gate = gate[:, None, :].astype(f32)

    # --- rotary tables with the rotate_half sign folded in (no iota/where in-kernel) ---
    even = (jnp.arange(D) % 2 == 0)
    sin_a = jnp.where(even, -sin_tab, 0.0).astype(f32)   # multiplies t[j+1]
    sin_b = jnp.where(even, 0.0, sin_tab).astype(f32)    # multiplies t[j-1]
    cos_tab = cos_tab.astype(f32)

    # --- bf16 weights for the MXU (f32 accumulation stays via preferred_element_type) ---
    w1 = params['w1'].astype(bf16)
    b1 = params['b1'].astype(f32)
    w2a = params['w2'][:Hs, :].astype(bf16)   # attention half of linear2
    w2b = params['w2'][Hs:, :].astype(bf16)   # mlp half of linear2
    b2 = params['b2'].astype(f32)
    qw = params['q_norm_w'].astype(f32)
    kw = params['k_norm_w'].astype(f32)

    x_f32 = x.astype(f32)
    nL = L // tile_l

    kern_a = functools.partial(_qkv_mlp_kernel, hidden_size=Hs, num_heads=H)
    cost_a = pl.CostEstimate(
        flops=2 * B * L * Hs * W1N + 2 * B * L * Mh * Hs,
        transcendentals=B * L * Mh,
        bytes_accessed=(4 * B * L * Hs + 2 * Hs * W1N + 2 * Mh * Hs
                        + 3 * 2 * B * H * L * D + 4 * B * L * Hs + 3 * 4 * L * D))

    q, k, v, mlp_out = pl.pallas_call(
        kern_a,
        out_shape=(
            jax.ShapeDtypeStruct((B, H, L, D), bf16),
            jax.ShapeDtypeStruct((B, H, L, D), bf16),
            jax.ShapeDtypeStruct((B, H, L, D), bf16),
            jax.ShapeDtypeStruct((B, L, Hs), f32),
        ),
        grid=(B, nL),
        in_specs=[
            pl.BlockSpec((1, tile_l, Hs), lambda b, l: (b, l, 0)),   # x
            pl.BlockSpec((1, 1, Hs), lambda b, l: (b, 0, 0)),        # shift
            pl.BlockSpec((1, 1, Hs), lambda b, l: (b, 0, 0)),        # scale
            pl.BlockSpec((Hs, W1N), lambda b, l: (0, 0)),            # w1 (bf16)
            pl.BlockSpec((1, W1N), lambda b, l: (0, 0)),             # b1
            pl.BlockSpec((1, D), lambda b, l: (0, 0)),               # q_norm weight
            pl.BlockSpec((1, D), lambda b, l: (0, 0)),               # k_norm weight
            pl.BlockSpec((tile_l, D), lambda b, l: (l, 0)),          # cos
            pl.BlockSpec((tile_l, D), lambda b, l: (l, 0)),          # sin_a
            pl.BlockSpec((tile_l, D), lambda b, l: (l, 0)),          # sin_b
            pl.BlockSpec((Mh, Hs), lambda b, l: (0, 0)),             # w2[Hs:] (bf16)
        ],
        out_specs=(
            pl.BlockSpec((1, H, tile_l, D), lambda b, l: (b, 0, l, 0)),
            pl.BlockSpec((1, H, tile_l, D), lambda b, l: (b, 0, l, 0)),
            pl.BlockSpec((1, H, tile_l, D), lambda b, l: (b, 0, l, 0)),
            pl.BlockSpec((1, tile_l, Hs), lambda b, l: (b, l, 0)),
        ),
        compiler_params=pltpu.CompilerParams(
            dimension_semantics=("parallel", "parallel"),
            vmem_limit_bytes=64 * 1024 * 1024),
        cost_estimate=cost_a,
    )(x_f32, shift, scale, w1, b1, qw, kw, cos_tab, sin_a, sin_b, w2b)

    nQ = L // tile_q
    nKV = L // tile_kv
    kern_b = functools.partial(_attn_out_kernel, hidden_size=Hs, num_heads=H)
    cost_b = pl.CostEstimate(
        flops=4 * B * H * L * L * D + 2 * B * L * Hs * Hs,
        transcendentals=B * H * L * L,
        bytes_accessed=(3 * 2 * B * H * L * D + 3 * 4 * B * L * Hs + 2 * Hs * Hs))

    out = pl.pallas_call(
        kern_b,
        out_shape=jax.ShapeDtypeStruct((B, L, Hs), x.dtype),
        grid=(B, nQ, nKV),
        in_specs=[
            pl.BlockSpec((1, H, tile_q, D), lambda b, qi, ki: (b, 0, qi, 0)),   # q
            pl.BlockSpec((1, H, tile_kv, D), lambda b, qi, ki: (b, 0, ki, 0)),  # k
            pl.BlockSpec((1, H, tile_kv, D), lambda b, qi, ki: (b, 0, ki, 0)),  # v
            pl.BlockSpec((1, tile_q, Hs), lambda b, qi, ki: (b, qi, 0)),        # x (residual)
            pl.BlockSpec((1, tile_q, Hs), lambda b, qi, ki: (b, qi, 0)),        # mlp partial
            pl.BlockSpec((Hs, Hs), lambda b, qi, ki: (0, 0)),                   # w2[:Hs] (bf16)
            pl.BlockSpec((1, Hs), lambda b, qi, ki: (0, 0)),                    # b2
            pl.BlockSpec((1, 1, Hs), lambda b, qi, ki: (b, 0, 0)),              # gate
        ],
        out_specs=pl.BlockSpec((1, tile_q, Hs), lambda b, qi, ki: (b, qi, 0)),
        scratch_shapes=[
            pltpu.VMEM((H, tile_q, 1), jnp.float32),   # running max
            pltpu.VMEM((H, tile_q, 1), jnp.float32),   # running sum
            pltpu.VMEM((H, tile_q, D), jnp.float32),   # output accumulator
        ],
        compiler_params=pltpu.CompilerParams(
            dimension_semantics=("parallel", "parallel", "arbitrary"),
            vmem_limit_bytes=64 * 1024 * 1024),
        cost_estimate=cost_b,
    )(q, k, v, x_f32, mlp_out, w2a, b2, gate)

    return out


# ----------------------------------- pure-JAX reference (f32) -----------------------------------
def reference_forward(x, vec, params, cos_img, sin_img, txt_len, num_heads):
    B, L, Hs = x.shape
    D = Hs // num_heads
    mod = jax.nn.silu(vec) @ params['w_mod'] + params['b_mod'][0]
    shift, scale, gate = jnp.split(mod, 3, axis=-1)

    mean = jnp.mean(x, -1, keepdims=True)
    var = jnp.mean((x - mean) ** 2, -1, keepdims=True)
    xn = (x - mean) / jnp.sqrt(var + 1e-6)
    x_mod = xn * (1.0 + scale[:, None, :]) + shift[:, None, :]

    h = x_mod @ params['w1'] + params['b1'][0]
    qkv, mlp = h[..., :3 * Hs], h[..., 3 * Hs:]
    qkv = qkv.reshape(B, L, 3, num_heads, D)
    q, k, v = qkv[:, :, 0], qkv[:, :, 1], qkv[:, :, 2]  # (B, L, H, D)

    def rms(t, w):
        return t * jax.lax.rsqrt(jnp.mean(t * t, -1, keepdims=True) + 1e-6) * w[0]
    q = rms(q, params['q_norm_w'])
    k = rms(k, params['k_norm_w'])

    def rot_half(t):
        t2 = t.reshape(*t.shape[:-1], D // 2, 2)
        return jnp.stack([-t2[..., 1], t2[..., 0]], axis=-1).reshape(t.shape)

    cos = cos_img[None, :, None, :]
    sin = sin_img[None, :, None, :]
    img_q, txt_q = q[:, :-txt_len], q[:, -txt_len:]
    img_k, txt_k = k[:, :-txt_len], k[:, -txt_len:]
    img_q = img_q * cos + rot_half(img_q) * sin
    img_k = img_k * cos + rot_half(img_k) * sin
    q = jnp.concatenate([img_q, txt_q], axis=1)
    k = jnp.concatenate([img_k, txt_k], axis=1)

    scores = jnp.einsum('blhd,bmhd->bhlm', q, k) * (D ** (-0.5))
    p = jax.nn.softmax(scores, axis=-1)
    attn = jnp.einsum('bhlm,bmhd->blhd', p, v).reshape(B, L, Hs)

    gelu = 0.5 * mlp * (1.0 + jnp.tanh(0.7978845608028654 * (mlp + 0.044715 * mlp ** 3)))
    out = jnp.concatenate([attn, gelu], axis=-1) @ params['w2'] + params['b2'][0]
    return x + out * gate[:, None, :]


if __name__ == "__main__":
    B, L_img, L_txt = 2, 24, 8
    L = L_img + L_txt
    hidden = 32
    heads = 2
    D = hidden // heads
    mlp_ratio = 4.0
    Mh = int(hidden * mlp_ratio)

    key = jax.random.PRNGKey(0)
    keys = jax.random.split(key, 12)

    def w(k, shape, s=0.02):
        return (s * jax.random.normal(k, shape)).astype(jnp.float32)

    params = dict(
        w_mod=w(keys[0], (hidden, 3 * hidden)),
        b_mod=w(keys[1], (1, 3 * hidden)),
        w1=w(keys[2], (hidden, 3 * hidden + Mh)),
        b1=w(keys[3], (1, 3 * hidden + Mh)),
        w2=w(keys[4], (hidden + Mh, hidden)),
        b2=w(keys[5], (1, hidden)),
        q_norm_w=(1.0 + 0.1 * jax.random.normal(keys[6], (1, D))).astype(jnp.float32),
        k_norm_w=(1.0 + 0.1 * jax.random.normal(keys[7], (1, D))).astype(jnp.float32),
    )
    x = jax.random.normal(keys[8], (B, L, hidden), dtype=jnp.float32)
    vec = jax.random.normal(keys[9], (B, hidden), dtype=jnp.float32)

    # rotary tables (interleaved-pair convention), image tokens only
    pos = jnp.arange(L_img, dtype=jnp.float32)[:, None]
    inv_freq = 1.0 / (10000.0 ** (jnp.arange(0, D, 2, dtype=jnp.float32) / D))
    ang = pos * inv_freq[None, :]                          # (L_img, D//2)
    cos_img = jnp.repeat(jnp.cos(ang), 2, axis=-1)         # (L_img, D)
    sin_img = jnp.repeat(jnp.sin(ang), 2, axis=-1)
    # pad to full length: txt tokens get identity rotation (cos=1, sin=0)
    cos_full = jnp.concatenate([cos_img, jnp.ones((L_txt, D), jnp.float32)], axis=0)
    sin_full = jnp.concatenate([sin_img, jnp.zeros((L_txt, D), jnp.float32)], axis=0)

    out = mm_single_stream_block(x, vec, params, cos_full, sin_full,
                                 hidden_size=hidden, num_heads=heads,
                                 tile_l=16, tile_q=16, tile_kv=16)
    out = jax.block_until_ready(out)

    ref = reference_forward(x, vec, params, cos_img, sin_img, L_txt, heads)
    np.testing.assert_allclose(np.asarray(out), np.asarray(ref), rtol=2e-2, atol=2e-2)
    print("KERNEL_OK")
</pallas_src>

<mosaic_0001>
module attributes {stable_mosaic.version = 11 : i64} {
  func.func @_qkv_mlp_kernel(%arg0: i32, %arg1: i32, %arg2: memref<1x16x32xf32, #tpu.memory_space<vmem>>, %arg3: memref<1x1x32xf32, #tpu.memory_space<vmem>>, %arg4: memref<1x1x32xf32, #tpu.memory_space<vmem>>, %arg5: memref<32x224xbf16, #tpu.memory_space<vmem>>, %arg6: memref<1x224xf32, #tpu.memory_space<vmem>>, %arg7: memref<1x16xf32, #tpu.memory_space<vmem>>, %arg8: memref<1x16xf32, #tpu.memory_space<vmem>>, %arg9: memref<16x16xf32, #tpu.memory_space<vmem>>, %arg10: memref<16x16xf32, #tpu.memory_space<vmem>>, %arg11: memref<16x16xf32, #tpu.memory_space<vmem>>, %arg12: memref<128x32xbf16, #tpu.memory_space<vmem>>, %arg13: memref<1x2x16x16xbf16, #tpu.memory_space<vmem>>, %arg14: memref<1x2x16x16xbf16, #tpu.memory_space<vmem>>, %arg15: memref<1x2x16x16xbf16, #tpu.memory_space<vmem>>, %arg16: memref<1x16x32xf32, #tpu.memory_space<vmem>>) attributes {dimension_semantics = [#tpu.dimension_semantics<parallel>, #tpu.dimension_semantics<parallel>], iteration_bounds = array<i64: 2, 2>, scalar_prefetch = 0 : i64, scratch_operands = 0 : i64, tpu.core_type = #tpu.core_type<tc>, window_params = [{transform_indices = @transform_0, window_bounds = array<i64: 1, 16, 32>}, {transform_indices = @transform_1, window_bounds = array<i64: 1, 1, 32>}, {transform_indices = @transform_2, window_bounds = array<i64: 1, 1, 32>}, {pipeline_mode = #tpu.pipeline_mode<synchronous>, transform_indices = @transform_3, window_bounds = array<i64: 32, 224>}, {pipeline_mode = #tpu.pipeline_mode<synchronous>, transform_indices = @transform_4, window_bounds = array<i64: 1, 224>}, {pipeline_mode = #tpu.pipeline_mode<synchronous>, transform_indices = @transform_5, window_bounds = array<i64: 1, 16>}, {pipeline_mode = #tpu.pipeline_mode<synchronous>, transform_indices = @transform_6, window_bounds = array<i64: 1, 16>}, {transform_indices = @transform_7, window_bounds = array<i64: 16, 16>}, {transform_indices = @transform_8, window_bounds = array<i64: 16, 16>}, {transform_indices = @transform_9, window_bounds = array<i64: 16, 16>}, {pipeline_mode = #tpu.pipeline_mode<synchronous>, transform_indices = @transform_10, window_bounds = array<i64: 128, 32>}, {transform_indices = @transform_11, window_bounds = array<i64: 1, 2, 16, 16>}, {transform_indices = @transform_12, window_bounds = array<i64: 1, 2, 16, 16>}, {transform_indices = @transform_13, window_bounds = array<i64: 1, 2, 16, 16>}, {transform_indices = @transform_14, window_bounds = array<i64: 1, 16, 32>}]} {
    %c0 = arith.constant 0 : index
    %c0_0 = arith.constant 0 : index
    %c0_1 = arith.constant 0 : index
    %0 = vector.load %arg2[%c0, %c0_0, %c0_1] : memref<1x16x32xf32, #tpu.memory_space<vmem>>, vector<1x16x32xf32>
    %1 = vector.shape_cast %0 : vector<1x16x32xf32> to vector<16x32xf32>
    %c0_2 = arith.constant 0 : index
    %c0_3 = arith.constant 0 : index
    %c0_4 = arith.constant 0 : index
    %2 = vector.load %arg3[%c0_2, %c0_3, %c0_4] : memref<1x1x32xf32, #tpu.memory_space<vmem>>, vector<1x1x32xf32>
    %3 = vector.shape_cast %2 : vector<1x1x32xf32> to vector<1x32xf32>
    %c0_5 = arith.constant 0 : index
    %c0_6 = arith.constant 0 : index
    %c0_7 = arith.constant 0 : index
    %4 = vector.load %arg4[%c0_5, %c0_6, %c0_7] : memref<1x1x32xf32, #tpu.memory_space<vmem>>, vector<1x1x32xf32>
    %5 = vector.shape_cast %4 : vector<1x1x32xf32> to vector<1x32xf32>
    %cst = arith.constant dense<0.000000e+00> : vector<16xf32>
    %6 = vector.multi_reduction <add>, %1, %cst [1] : vector<16x32xf32> to vector<16xf32>
    %7 = vector.shape_cast %6 : vector<16xf32> to vector<16x1xf32>
    %cst_8 = arith.constant 3.200000e+01 : f32
    %8 = vector.broadcast %cst_8 : f32 to vector<16x1xf32>
    %9 = arith.divf %7, %8 : vector<16x1xf32>
    %10 = vector.broadcast %9 : vector<16x1xf32> to vector<16x32xf32>
    %11 = arith.subf %1, %10 : vector<16x32xf32>
    %12 = arith.mulf %11, %11 : vector<16x32xf32>
    %cst_9 = arith.constant dense<0.000000e+00> : vector<16xf32>
    %13 = vector.multi_reduction <add>, %12, %cst_9 [1] : vector<16x32xf32> to vector<16xf32>
    %14 = vector.shape_cast %13 : vector<16xf32> to vector<16x1xf32>
    %cst_10 = arith.constant 3.200000e+01 : f32
    %15 = vector.broadcast %cst_10 : f32 to vector<16x1xf32>
    %16 = arith.divf %14, %15 : vector<16x1xf32>
    %cst_11 = arith.constant 9.99999997E-7 : f32
    %17 = vector.broadcast %cst_11 : f32 to vector<16x1xf32>
    %18 = arith.addf %16, %17 : vector<16x1xf32>
    %19 = math.rsqrt %18 : vector<16x1xf32>
    %20 = vector.broadcast %19 : vector<16x1xf32> to vector<16x32xf32>
    %21 = arith.mulf %11, %20 : vector<16x32xf32>
    %cst_12 = arith.constant 1.000000e+00 : f32
    %22 = vector.broadcast %cst_12 : f32 to vector<1x32xf32>
    %23 = arith.addf %22, %5 : vector<1x32xf32>
    %24 = vector.broadcast %23 : vector<1x32xf32> to vector<16x32xf32>
    %25 = arith.mulf %21, %24 : vector<16x32xf32>
    %26 = vector.broadcast %3 : vector<1x32xf32> to vector<16x32xf32>
    %27 = arith.addf %25, %26 : vector<16x32xf32>
    %28 = arith.truncf %27 : vector<16x32xf32> to vector<16x32xbf16>
    %c0_13 = arith.constant 0 : index
    %c0_14 = arith.constant 0 : index
    %29 = vector.load %arg5[%c0_13, %c0_14] : memref<32x224xbf16, #tpu.memory_space<vmem>>, vector<32x224xbf16>
    %cst_15 = arith.constant dense<0.000000e+00> : vector<16x224xf32>
    %30 = tpu.matmul %28, %29, %cst_15 {dimension_numbers = #tpu.dot_dimension_numbers<[1], [0], [0], [1], [0, 0, 1, 1], [], []>} : vector<16x32xbf16>, vector<32x224xbf16>, vector<16x224xf32> -> vector<16x224xf32>
    %c0_16 = arith.constant 0 : index
    %c0_17 = arith.constant 0 : index
    %31 = vector.load %arg6[%c0_16, %c0_17] : memref<1x224xf32, #tpu.memory_space<vmem>>, vector<1x224xf32>
    %32 = vector.broadcast %31 : vector<1x224xf32> to vector<16x224xf32>
    %33 = arith.addf %30, %32 : vector<16x224xf32>
    %c0_18 = arith.constant 0 : index
    %c0_19 = arith.constant 0 : index
    %34 = vector.load %arg9[%c0_18, %c0_19] : memref<16x16xf32, #tpu.memory_space<vmem>>, vector<16x16xf32>
    %c0_20 = arith.constant 0 : index
    %c0_21 = arith.constant 0 : index
    %35 = vector.load %arg10[%c0_20, %c0_21] : memref<16x16xf32, #tpu.memory_space<vmem>>, vector<16x16xf32>
    %c0_22 = arith.constant 0 : index
    %c0_23 = arith.constant 0 : index
    %36 = vector.load %arg11[%c0_22, %c0_23] : memref<16x16xf32, #tpu.memory_space<vmem>>, vector<16x16xf32>
    %c0_24 = arith.constant 0 : index
    %c0_25 = arith.constant 0 : index
    %37 = vector.load %arg7[%c0_24, %c0_25] : memref<1x16xf32, #tpu.memory_space<vmem>>, vector<1x16xf32>
    %c0_26 = arith.constant 0 : index
    %c0_27 = arith.constant 0 : index
    %38 = vector.load %arg8[%c0_26, %c0_27] : memref<1x16xf32, #tpu.memory_space<vmem>>, vector<1x16xf32>
    %39 = vector.extract_strided_slice %33 {offsets = [0, 0], sizes = [16, 16], strides = [1, 1]} : vector<16x224xf32> to vector<16x16xf32>
    %40 = arith.mulf %39, %39 : vector<16x16xf32>
    %cst_28 = arith.constant dense<0.000000e+00> : vector<16xf32>
    %41 = vector.multi_reduction <add>, %40, %cst_28 [1] : vector<16x16xf32> to vector<16xf32>
    %42 = vector.shape_cast %41 : vector<16xf32> to vector<16x1xf32>
    %cst_29 = arith.constant 1.600000e+01 : f32
    %43 = vector.broadcast %cst_29 : f32 to vector<16x1xf32>
    %44 = arith.divf %42, %43 : vector<16x1xf32>
    %cst_30 = arith.constant 9.99999997E-7 : f32
    %45 = vector.broadcast %cst_30 : f32 to vector<16x1xf32>
    %46 = arith.addf %44, %45 : vector<16x1xf32>
    %47 = math.rsqrt %46 : vector<16x1xf32>
    %48 = vector.broadcast %47 : vector<16x1xf32> to vector<16x16xf32>
    %49 = arith.mulf %39, %48 : vector<16x16xf32>
    %50 = vector.broadcast %37 : vector<1x16xf32> to vector<16x16xf32>
    %51 = arith.mulf %49, %50 : vector<16x16xf32>
    %52 = arith.mulf %51, %34 : vector<16x16xf32>
    %53 = vector.extract_strided_slice %51 {offsets = [0, 1], sizes = [16, 15], strides = [1, 1]} : vector<16x16xf32> to vector<16x15xf32>
    %54 = vector.extract_strided_slice %51 {offsets = [0, 0], sizes = [16, 1], strides = [1, 1]} : vector<16x16xf32> to vector<16x1xf32>
    %55 = tpu.concatenate %53, %54 in 1 : vector<16x15xf32>, vector<16x1xf32> -> vector<16x16xf32>
    %56 = arith.mulf %55, %35 : vector<16x16xf32>
    %57 = arith.addf %52, %56 : vector<16x16xf32>
    %58 = vector.extract_strided_slice %51 {offsets = [0, 15], sizes = [16, 1], strides = [1, 1]} : vector<16x16xf32> to vector<16x1xf32>
    %59 = vector.extract_strided_slice %51 {offsets = [0, 0], sizes = [16, 15], strides = [1, 1]} : vector<16x16xf32> to vector<16x15xf32>
    %60 = tpu.concatenate %58, %59 in 1 : vector<16x1xf32>, vector<16x15xf32> -> vector<16x16xf32>
    %61 = arith.mulf %60, %36 : vector<16x16xf32>
    %62 = arith.addf %57, %61 : vector<16x16xf32>
    %cst_31 = arith.constant 2.500000e-01 : f32
    %63 = vector.broadcast %cst_31 : f32 to vector<16x16xf32>
    %64 = arith.mulf %62, %63 : vector<16x16xf32>
    %65 = vector.extract_strided_slice %33 {offsets = [0, 32], sizes = [16, 16], strides = [1, 1]} : vector<16x224xf32> to vector<16x16xf32>
    %66 = arith.mulf %65, %65 : vector<16x16xf32>
    %cst_32 = arith.constant dense<0.000000e+00> : vector<16xf32>
    %67 = vector.multi_reduction <add>, %66, %cst_32 [1] : vector<16x16xf32> to vector<16xf32>
    %68 = vector.shape_cast %67 : vector<16xf32> to vector<16x1xf32>
    %cst_33 = arith.constant 1.600000e+01 : f32
    %69 = vector.broadcast %cst_33 : f32 to vector<16x1xf32>
    %70 = arith.divf %68, %69 : vector<16x1xf32>
    %cst_34 = arith.constant 9.99999997E-7 : f32
    %71 = vector.broadcast %cst_34 : f32 to vector<16x1xf32>
    %72 = arith.addf %70, %71 : vector<16x1xf32>
    %73 = math.rsqrt %72 : vector<16x1xf32>
    %74 = vector.broadcast %73 : vector<16x1xf32> to vector<16x16xf32>
    %75 = arith.mulf %65, %74 : vector<16x16xf32>
    %76 = vector.broadcast %38 : vector<1x16xf32> to vector<16x16xf32>
    %77 = arith.mulf %75, %76 : vector<16x16xf32>
    %78 = arith.mulf %77, %34 : vector<16x16xf32>
    %79 = vector.extract_strided_slice %77 {offsets = [0, 1], sizes = [16, 15], strides = [1, 1]} : vector<16x16xf32> to vector<16x15xf32>
    %80 = vector.extract_strided_slice %77 {offsets = [0, 0], sizes = [16, 1], strides = [1, 1]} : vector<16x16xf32> to vector<16x1xf32>
    %81 = tpu.concatenate %79, %80 in 1 : vector<16x15xf32>, vector<16x1xf32> -> vector<16x16xf32>
    %82 = arith.mulf %81, %35 : vector<16x16xf32>
    %83 = arith.addf %78, %82 : vector<16x16xf32>
    %84 = vector.extract_strided_slice %77 {offsets = [0, 15], sizes = [16, 1], strides = [1, 1]} : vector<16x16xf32> to vector<16x1xf32>
    %85 = vector.extract_strided_slice %77 {offsets = [0, 0], sizes = [16, 15], strides = [1, 1]} : vector<16x16xf32> to vector<16x15xf32>
    %86 = tpu.concatenate %84, %85 in 1 : vector<16x1xf32>, vector<16x15xf32> -> vector<16x16xf32>
    %87 = arith.mulf %86, %36 : vector<16x16xf32>
    %88 = arith.addf %83, %87 : vector<16x16xf32>
    %89 = vector.extract_strided_slice %33 {offsets = [0, 64], sizes = [16, 16], strides = [1, 1]} : vector<16x224xf32> to vector<16x16xf32>
    %90 = arith.truncf %64 : vector<16x16xf32> to vector<16x16xbf16>
    %c0_35 = arith.constant 0 : index
    %c0_36 = arith.constant 0 : index
    %c0_37 = arith.constant 0 : index
    %c0_38 = arith.constant 0 : index
    %91 = vector.load %arg13[%c0_35, %c0_36, %c0_37, %c0_38] : memref<1x2x16x16xbf16, #tpu.memory_space<vmem>>, vector<1x1x16x16xbf16>
    %92 = vector.shape_cast %91 : vector<1x1x16x16xbf16> to vector<16x16xbf16>
    %93 = vector.shape_cast %90 : vector<16x16xbf16> to vector<1x1x16x16xbf16>
    tpu.vector_store %arg13[%c0_35, %c0_36, %c0_37, %c0_38], %93 {strides = array<i32>} : memref<1x2x16x16xbf16, #tpu.memory_space<vmem>>, vector<1x1x16x16xbf16>,
    %94 = arith.truncf %88 : vector<16x16xf32> to vector<16x16xbf16>
    %c0_39 = arith.constant 0 : index
    %c0_40 = arith.constant 0 : index
    %c0_41 = arith.constant 0 : index
    %c0_42 = arith.constant 0 : index
    %95 = vector.load %arg14[%c0_39, %c0_40, %c0_41, %c0_42] : memref<1x2x16x16xbf16, #tpu.memory_space<vmem>>, vector<1x1x16x16xbf16>
    %96 = vector.shape_cast %95 : vector<1x1x16x16xbf16> to vector<16x16xbf16>
    %97 = vector.shape_cast %94 : vector<16x16xbf16> to vector<1x1x16x16xbf16>
    tpu.vector_store %arg14[%c0_39, %c0_40, %c0_41, %c0_42], %97 {strides = array<i32>} : memref<1x2x16x16xbf16, #tpu.memory_space<vmem>>, vector<1x1x16x16xbf16>,
    %98 = arith.truncf %89 : vector<16x16xf32> to vector<16x16xbf16>
    %c0_43 = arith.constant 0 : index
    %c0_44 = arith.constant 0 : index
    %c0_45 = arith.constant 0 : index
    %c0_46 = arith.constant 0 : index
    %99 = vector.load %arg15[%c0_43, %c0_44, %c0_45, %c0_46] : memref<1x2x16x16xbf16, #tpu.memory_space<vmem>>, vector<1x1x16x16xbf16>
    %100 = vector.shape_cast %99 : vector<1x1x16x16xbf16> to vector<16x16xbf16>
    %101 = vector.shape_cast %98 : vector<16x16xbf16> to vector<1x1x16x16xbf16>
    tpu.vector_store %arg15[%c0_43, %c0_44, %c0_45, %c0_46], %101 {strides = array<i32>} : memref<1x2x16x16xbf16, #tpu.memory_space<vmem>>, vector<1x1x16x16xbf16>,
    %102 = vector.extract_strided_slice %33 {offsets = [0, 16], sizes = [16, 16], strides = [1, 1]} : vector<16x224xf32> to vector<16x16xf32>
    %103 = arith.mulf %102, %102 : vector<16x16xf32>
    %cst_47 = arith.constant dense<0.000000e+00> : vector<16xf32>
    %104 = vector.multi_reduction <add>, %103, %cst_47 [1] : vector<16x16xf32> to vector<16xf32>
    %105 = vector.shape_cast %104 : vector<16xf32> to vector<16x1xf32>
    %cst_48 = arith.constant 1.600000e+01 : f32
    %106 = vector.broadcast %cst_48 : f32 to vector<16x1xf32>
    %107 = arith.divf %105, %106 : vector<16x1xf32>
    %cst_49 = arith.constant 9.99999997E-7 : f32
    %108 = vector.broadcast %cst_49 : f32 to vector<16x1xf32>
    %109 = arith.addf %107, %108 : vector<16x1xf32>
    %110 = math.rsqrt %109 : vector<16x1xf32>
    %111 = vector.broadcast %110 : vector<16x1xf32> to vector<16x16xf32>
    %112 = arith.mulf %102, %111 : vector<16x16xf32>
    %113 = vector.broadcast %37 : vector<1x16xf32> to vector<16x16xf32>
    %114 = arith.mulf %112, %113 : vector<16x16xf32>
    %115 = arith.mulf %114, %34 : vector<16x16xf32>
    %116 = vector.extract_strided_slice %114 {offsets = [0, 1], sizes = [16, 15], strides = [1, 1]} : vector<16x16xf32> to vector<16x15xf32>
    %117 = vector.extract_strided_slice %114 {offsets = [0, 0], sizes = [16, 1], strides = [1, 1]} : vector<16x16xf32> to vector<16x1xf32>
    %118 = tpu.concatenate %116, %117 in 1 : vector<16x15xf32>, vector<16x1xf32> -> vector<16x16xf32>
    %119 = arith.mulf %118, %35 : vector<16x16xf32>
    %120 = arith.addf %115, %119 : vector<16x16xf32>
    %121 = vector.extract_strided_slice %114 {offsets = [0, 15], sizes = [16, 1], strides = [1, 1]} : vector<16x16xf32> to vector<16x1xf32>
    %122 = vector.extract_strided_slice %114 {offsets = [0, 0], sizes = [16, 15], strides = [1, 1]} : vector<16x16xf32> to vector<16x15xf32>
    %123 = tpu.concatenate %121, %122 in 1 : vector<16x1xf32>, vector<16x15xf32> -> vector<16x16xf32>
    %124 = arith.mulf %123, %36 : vector<16x16xf32>
    %125 = arith.addf %120, %124 : vector<16x16xf32>
    %cst_50 = arith.constant 2.500000e-01 : f32
    %126 = vector.broadcast %cst_50 : f32 to vector<16x16xf32>
    %127 = arith.mulf %125, %126 : vector<16x16xf32>
    %128 = vector.extract_strided_slice %33 {offsets = [0, 48], sizes = [16, 16], strides = [1, 1]} : vector<16x224xf32> to vector<16x16xf32>
    %129 = arith.mulf %128, %128 : vector<16x16xf32>
    %cst_51 = arith.constant dense<0.000000e+00> : vector<16xf32>
    %130 = vector.multi_reduction <add>, %129, %cst_51 [1] : vector<16x16xf32> to vector<16xf32>
    %131 = vector.shape_cast %130 : vector<16xf32> to vector<16x1xf32>
    %cst_52 = arith.constant 1.600000e+01 : f32
    %132 = vector.broadcast %cst_52 : f32 to vector<16x1xf32>
    %133 = arith.divf %131, %132 : vector<16x1xf32>
    %cst_53 = arith.constant 9.99999997E-7 : f32
    %134 = vector.broadcast %cst_53 : f32 to vector<16x1xf32>
    %135 = arith.addf %133, %134 : vector<16x1xf32>
    %136 = math.rsqrt %135 : vector<16x1xf32>
    %137 = vector.broadcast %136 : vector<16x1xf32> to vector<16x16xf32>
    %138 = arith.mulf %128, %137 : vector<16x16xf32>
    %139 = vector.broadcast %38 : vector<1x16xf32> to vector<16x16xf32>
    %140 = arith.mulf %138, %139 : vector<16x16xf32>
    %141 = arith.mulf %140, %34 : vector<16x16xf32>
    %142 = vector.extract_strided_slice %140 {offsets = [0, 1], sizes = [16, 15], strides = [1, 1]} : vector<16x16xf32> to vector<16x15xf32>
    %143 = vector.extract_strided_slice %140 {offsets = [0, 0], sizes = [16, 1], strides = [1, 1]} : vector<16x16xf32> to vector<16x1xf32>
    %144 = tpu.concatenate %142, %143 in 1 : vector<16x15xf32>, vector<16x1xf32> -> vector<16x16xf32>
    %145 = arith.mulf %144, %35 : vector<16x16xf32>
    %146 = arith.addf %141, %145 : vector<16x16xf32>
    %147 = vector.extract_strided_slice %140 {offsets = [0, 15], sizes = [16, 1], strides = [1, 1]} : vector<16x16xf32> to vector<16x1xf32>
    %148 = vector.extract_strided_slice %140 {offsets = [0, 0], sizes = [16, 15], strides = [1, 1]} : vector<16x16xf32> to vector<16x15xf32>
    %149 = tpu.concatenate %147, %148 in 1 : vector<16x1xf32>, vector<16x15xf32> -> vector<16x16xf32>
    %150 = arith.mulf %149, %36 : vector<16x16xf32>
    %151 = arith.addf %146, %150 : vector<16x16xf32>
    %152 = vector.extract_strided_slice %33 {offsets = [0, 80], sizes = [16, 16], strides = [1, 1]} : vector<16x224xf32> to vector<16x16xf32>
    %153 = arith.truncf %127 : vector<16x16xf32> to vector<16x16xbf16>
    %c0_54 = arith.constant 0 : index
    %c1 = arith.constant 1 : index
    %c0_55 = arith.constant 0 : index
    %c0_56 = arith.constant 0 : index
    %154 = vector.load %arg13[%c0_54, %c1, %c0_55, %c0_56] : memref<1x2x16x16xbf16, #tpu.memory_space<vmem>>, vector<1x1x16x16xbf16>
    %155 = vector.shape_cast %154 : vector<1x1x16x16xbf16> to vector<16x16xbf16>
    %156 = vector.shape_cast %153 : vector<16x16xbf16> to vector<1x1x16x16xbf16>
    tpu.vector_store %arg13[%c0_54, %c1, %c0_55, %c0_56], %156 {strides = array<i32>} : memref<1x2x16x16xbf16, #tpu.memory_space<vmem>>, vector<1x1x16x16xbf16>,
    %157 = arith.truncf %151 : vector<16x16xf32> to vector<16x16xbf16>
    %c0_57 = arith.constant 0 : index
    %c1_58 = arith.constant 1 : index
    %c0_59 = arith.constant 0 : index
    %c0_60 = arith.constant 0 : index
    %158 = vector.load %arg14[%c0_57, %c1_58, %c0_59, %c0_60] : memref<1x2x16x16xbf16, #tpu.memory_space<vmem>>, vector<1x1x16x16xbf16>
    %159 = vector.shape_cast %158 : vector<1x1x16x16xbf16> to vector<16x16xbf16>
    %160 = vector.shape_cast %157 : vector<16x16xbf16> to vector<1x1x16x16xbf16>
    tpu.vector_store %arg14[%c0_57, %c1_58, %c0_59, %c0_60], %160 {strides = array<i32>} : memref<1x2x16x16xbf16, #tpu.memory_space<vmem>>, vector<1x1x16x16xbf16>,
    %161 = arith.truncf %152 : vector<16x16xf32> to vector<16x16xbf16>
    %c0_61 = arith.constant 0 : index
    %c1_62 = arith.constant 1 : index
    %c0_63 = arith.constant 0 : index
    %c0_64 = arith.constant 0 : index
    %162 = vector.load %arg15[%c0_61, %c1_62, %c0_63, %c0_64] : memref<1x2x16x16xbf16, #tpu.memory_space<vmem>>, vector<1x1x16x16xbf16>
    %163 = vector.shape_cast %162 : vector<1x1x16x16xbf16> to vector<16x16xbf16>
    %164 = vector.shape_cast %161 : vector<16x16xbf16> to vector<1x1x16x16xbf16>
    tpu.vector_store %arg15[%c0_61, %c1_62, %c0_63, %c0_64], %164 {strides = array<i32>} : memref<1x2x16x16xbf16, #tpu.memory_space<vmem>>, vector<1x1x16x16xbf16>,
    %165 = vector.extract_strided_slice %33 {offsets = [0, 96], sizes = [16, 128], strides = [1, 1]} : vector<16x224xf32> to vector<16x128xf32>
    %cst_65 = arith.constant 5.000000e-01 : f32
    %166 = vector.broadcast %cst_65 : f32 to vector<16x128xf32>
    %167 = arith.mulf %166, %165 : vector<16x128xf32>
    %cst_66 = arith.constant 4.471500e-02 : f32
    %168 = vector.broadcast %cst_66 : f32 to vector<16x128xf32>
    %169 = arith.mulf %168, %165 : vector<16x128xf32>
    %170 = arith.mulf %169, %165 : vector<16x128xf32>
    %171 = arith.mulf %170, %165 : vector<16x128xf32>
    %172 = arith.addf %165, %171 : vector<16x128xf32>
    %cst_67 = arith.constant 0.797884583 : f32
    %173 = vector.broadcast %cst_67 : f32 to vector<16x128xf32>
    %174 = arith.mulf %173, %172 : vector<16x128xf32>
    %175 = math.tanh %174 : vector<16x128xf32>
    %cst_68 = arith.constant 1.000000e+00 : f32
    %176 = vector.broadcast %cst_68 : f32 to vector<16x128xf32>
    %177 = arith.addf %176, %175 : vector<16x128xf32>
    %178 = arith.mulf %167, %177 : vector<16x128xf32>
    %179 = arith.truncf %178 : vector<16x128xf32> to vector<16x128xbf16>
    %c0_69 = arith.constant 0 : index
    %c0_70 = arith.constant 0 : index
    %180 = vector.load %arg12[%c0_69, %c0_70] : memref<128x32xbf16, #tpu.memory_space<vmem>>, vector<128x32xbf16>
    %cst_71 = arith.constant dense<0.000000e+00> : vector<16x32xf32>
    %181 = tpu.matmul %179, %180, %cst_71 {dimension_numbers = #tpu.dot_dimension_numbers<[1], [0], [0], [1], [0, 0, 1, 1], [], []>} : vector<16x128xbf16>, vector<128x32xbf16>, vector<16x32xf32> -> vector<16x32xf32>
    %c0_72 = arith.constant 0 : index
    %c0_73 = arith.constant 0 : index
    %c0_74 = arith.constant 0 : index
    %182 = vector.load %arg16[%c0_72, %c0_73, %c0_74] : memref<1x16x32xf32, #tpu.memory_space<vmem>>, vector<1x16x32xf32>
    %183 = vector.shape_cast %182 : vector<1x16x32xf32> to vector<16x32xf32>
    %184 = vector.shape_cast %181 : vector<16x32xf32> to vector<1x16x32xf32>
    tpu.vector_store %arg16[%c0_72, %c0_73, %c0_74], %184 {strides = array<i32>} : memref<1x16x32xf32, #tpu.memory_space<vmem>>, vector<1x16x32xf32>,
    return
  }
  func.func @transform_0(%arg0: i32, %arg1: i32) -> (i32, i32, i32) {
    %c0_i32 = arith.constant 0 : i32
    %c0_i32_0 = arith.constant 0 : i32
    return %arg0, %arg1, %c0_i32 : i32, i32, i32
  }
  func.func @transform_1(%arg0: i32, %arg1: i32) -> (i32, i32, i32) {
    %c0_i32 = arith.constant 0 : i32
    %c0_i32_0 = arith.constant 0 : i32
    %c0_i32_1 = arith.constant 0 : i32
    return %arg0, %c0_i32, %c0_i32_0 : i32, i32, i32
  }
  func.func @transform_2(%arg0: i32, %arg1: i32) -> (i32, i32, i32) {
    %c0_i32 = arith.constant 0 : i32
    %c0_i32_0 = arith.constant 0 : i32
    %c0_i32_1 = arith.constant 0 : i32
    return %arg0, %c0_i32, %c0_i32_0 : i32, i32, i32
  }
  func.func @transform_3(%arg0: i32, %arg1: i32) -> (i32, i32) {
    %c0_i32 = arith.constant 0 : i32
    %c0_i32_0 = arith.constant 0 : i32
    %c0_i32_1 = arith.constant 0 : i32
    return %c0_i32, %c0_i32_0 : i32, i32
  }
  func.func @transform_4(%arg0: i32, %arg1: i32) -> (i32, i32) {
    %c0_i32 = arith.constant 0 : i32
    %c0_i32_0 = arith.constant 0 : i32
    %c0_i32_1 = arith.constant 0 : i32
    return %c0_i32, %c0_i32_0 : i32, i32
  }
  func.func @transform_5(%arg0: i32, %arg1: i32) -> (i32, i32) {
    %c0_i32 = arith.constant 0 : i32
    %c0_i32_0 = arith.constant 0 : i32
    %c0_i32_1 = arith.constant 0 : i32
    return %c0_i32, %c0_i32_0 : i32, i32
  }
  func.func @transform_6(%arg0: i32, %arg1: i32) -> (i32, i32) {
    %c0_i32 = arith.constant 0 : i32
    %c0_i32_0 = arith.constant 0 : i32
    %c0_i32_1 = arith.constant 0 : i32
    return %c0_i32, %c0_i32_0 : i32, i32
  }
  func.func @transform_7(%arg0: i32, %arg1: i32) -> (i32, i32) {
    %c0_i32 = arith.constant 0 : i32
    %c0_i32_0 = arith.constant 0 : i32
    return %arg1, %c0_i32 : i32, i32
  }
  func.func @transform_8(%arg0: i32, %arg1: i32) -> (i32, i32) {
    %c0_i32 = arith.constant 0 : i32
    %c0_i32_0 = arith.constant 0 : i32
    return %arg1, %c0_i32 : i32, i32
  }
  func.func @transform_9(%arg0: i32, %arg1: i32) -> (i32, i32) {
    %c0_i32 = arith.constant 0 : i32
    %c0_i32_0 = arith.constant 0 : i32
    return %arg1, %c0_i32 : i32, i32
  }
  func.func @transform_10(%arg0: i32, %arg1: i32) -> (i32, i32) {
    %c0_i32 = arith.constant 0 : i32
    %c0_i32_0 = arith.constant 0 : i32
    %c0_i32_1 = arith.constant 0 : i32
    return %c0_i32, %c0_i32_0 : i32, i32
  }
  func.func @transform_11(%arg0: i32, %arg1: i32) -> (i32, i32, i32, i32) {
    %c0_i32 = arith.constant 0 : i32
    %c0_i32_0 = arith.constant 0 : i32
    %c0_i32_1 = arith.constant 0 : i32
    return %arg0, %c0_i32, %arg1, %c0_i32_0 : i32, i32, i32, i32
  }
  func.func @transform_12(%arg0: i32, %arg1: i32) -> (i32, i32, i32, i32) {
    %c0_i32 = arith.constant 0 : i32
    %c0_i32_0 = arith.constant 0 : i32
    %c0_i32_1 = arith.constant 0 : i32
    return %arg0, %c0_i32, %arg1, %c0_i32_0 : i32, i32, i32, i32
  }
  func.func @transform_13(%arg0: i32, %arg1: i32) -> (i32, i32, i32, i32) {
    %c0_i32 = arith.constant 0 : i32
    %c0_i32_0 = arith.constant 0 : i32
    %c0_i32_1 = arith.constant 0 : i32
    return %arg0, %c0_i32, %arg1, %c0_i32_0 : i32, i32, i32, i32
  }
  func.func @transform_14(%arg0: i32, %arg1: i32) -> (i32, i32, i32) {
    %c0_i32 = arith.constant 0 : i32
    %c0_i32_0 = arith.constant 0 : i32
    return %arg0, %arg1, %c0_i32 : i32, i32, i32
  }
}

</mosaic_0001>

<bundles_post_ra>
// kernel: tpu_custom_call.1
= control target key start
LH: loop header
LB: loop body
LE: loop exit
PB: predicated region body
PF: predicated region fallthrough
CT: control target
= control target key end

     0   :  { %s2724_s0 = inlined_call_operand.vmem [shape: f32[2,32,32], index: 0, kind: input, shape index: {}]   ;;  %s2725_s1 = inlined_call_operand.vmem [shape: f32[2,1,32], index: 1, kind: input, shape index: {}]   ;;  %s2726_s2 = inlined_call_operand.vmem [shape: f32[2,1,32], index: 2, kind: input, shape index: {}]   ;;  %s2727_s3 = inlined_call_operand.vmem [shape: bf16[32,224], index: 3, kind: input, shape index: {}]   ;;  %s2728_s4 = inlined_call_operand.vmem [shape: f32[1,224], index: 4, kind: input, shape index: {}]   ;;  %s2729_s5 = inlined_call_operand.vmem [shape: f32[1,16], index: 5, kind: input, shape index: {}]   ;;  %s2730_s6 = inlined_call_operand.vmem [shape: f32[1,16], index: 6, kind: input, shape index: {}]   ;;  %s2731_s7 = inlined_call_operand.vmem [shape: f32[32,16], index: 7, kind: input, shape index: {}]   ;;  %s2732_s8 = inlined_call_operand.vmem [shape: f32[32,16], index: 8, kind: input, shape index: {}]   ;;  %s2733_s9 = inlined_call_operand.vmem [shape: f32[32,16], index: 9, kind: input, shape index: {}]   ;;  %s2734_s10 = inlined_call_operand.vmem [shape: bf16[128,32], index: 10, kind: input, shape index: {}]   ;;  %s2735_s11 = inlined_call_operand.vmem [shape: bf16[2,2,32,16], index: 11, kind: output, shape index: {0}]   ;;  %s2736_s12 = inlined_call_operand.vmem [shape: bf16[2,2,32,16], index: 12, kind: output, shape index: {1}]   ;;  %s2737_s13 = inlined_call_operand.vmem [shape: bf16[2,2,32,16], index: 13, kind: output, shape index: {2}]   ;;  %s2738_s14 = inlined_call_operand.hbm [shape: f32[2,32,32], index: 14, kind: output, shape index: {3}]  }
   0x1   :  { %2755 = sst [smem:[#allocation13_spill]] %s2724_s0 }
   0x2   :  { %2756 = sst [smem:[#allocation14_spill]] %s2725_s1 }
   0x3   :  { %2757 = sst [smem:[#allocation15_spill]] %s2726_s2 }
   0x4   :  { %2758 = sst [smem:[#allocation16_spill]] %s2727_s3 }
   0x5   :  { %2759 = sst [smem:[#allocation17_spill]] %s2738_s14 }
   0x6   :  { %20 = vsyncpa [#allocation6], 0 }
   0x7   :  { %22 = vsyncpa [#allocation6 + $0x1], 0  ;;  %s2208_s29 = smov 0   ;;  %s2210_s30 = smov 0  }
   0x8   :  { %s2212_s15 = smov 0   ;;  %s2214_s16 = smov 0  }
   0x9   :  { %s2216_s17 = smov 0   ;;  %s2218_s18 = smov 0  }
   0xa   :  { %s2220_s19 = smov 0   ;;  %s2222_s20 = smov 0  }
   0xb LB: > { %2760 = sst [smem:[#allocation8_spill]] %s2100_s18  ;;  %s1774_s21 = sadd.s32 4294967295, %s2108_s20   ;;  %s2108_s20 = sphi %s2222_s20, %s28_s20   ;;  %s2104_s19 = sphi %s2220_s19, %s2782_s19   ;;  %s2100_s18 = sphi %s2218_s18, %s2781_s18   ;;  %s2096_s17 = sphi %s2216_s17, %s2780_s17   ;;  %s2092_s16 = sphi %s2214_s16, %s2779_s16   ;;  %s2088_s15 = sphi %s2212_s15, %s2785_s15   ;;  %s2084_s30 = sphi %s2210_s30, %s2784_s30   ;;  %s2080_s29 = sphi %s2208_s29, %s2783_s29  }
   0xc   : > { %2761 = sst [smem:[#allocation9_spill]] %s2104_s19  ;;  %s1775_s22 = sadd.s32 4294967294, %s2108_s20  }
   0xd   : > { %s37_s23 = sadd.s32 1, %s2100_s18  ;;  %s40_s24 = sadd.s32 1, %s2104_s19 }
   0xe   : > { %p38_p0 = scmp.ge.s32.totalorder %s37_s23, 2  ;;  %p322_p1 = scmp.ne.s32.totalorder %s2088_s15, %s2084_s30 }
   0xf   : > { %p323_p2 = scmp.eq.s32.totalorder %s1774_s21, 3  ;;  %p412_p5 = scmp.ne.s32.totalorder %s2084_s30, %s2080_s29 }
  0x10   : > { %s2787_s23 = smov (%p38_p0, %s37_s23), 0  ;;  %s2789_s24 = smov (!%p38_p0, %s40_s24), %s2104_s19 }
  0x11   : > { %2762 = sst [smem:[#allocation10_spill]] %s2787_s23  ;;  %s308_s25 = ssub.s32 %s2100_s18, %s2787_s23 }
  0x12   : > { %p2259_p3 = por %p323_p2, %p322_p1  ;;  %p42_p4 = scmp.ge.s32.totalorder %s2789_s24, 2 }
  0x13   : > { %p413_p6 = scmp.eq.s32.totalorder %s1775_s22, 3  ;;  %p1778_p7 = scmp.ge.s32.totalorder %s2108_s20, 1 }
  0x14   : > { %s2791_s24 = smov (%p42_p4, %s2789_s24), 0  ;;  %p498_p9 = scmp.lt.s32.totalorder %s2108_s20, 5 }
  0x15   : > { %2764 = sst [smem:[#allocation11_spill]] %s2791_s24  ;;  %p2268_p8 = por %p413_p6, %p412_p5 }
  0x16   : > { %s307_s28 = ssub.s32 %s2104_s19, %s2791_s24  ;;  %s312_s21 = sadd.s32 1, %s2088_s15 }
  0x17   : > { %s309_s14 = sor.u32 %s308_s25, %s307_s28  ;;  %p499_p10 = pnand %p1778_p7, %p498_p9 }
  0x18   : > { %p310_p11 = scmp.eq.s32.totalorder %s309_s14, 0  ;;  %s2280_s22 = sshll.u32 (!%p499_p10), %s2092_s16, 1 }
  0x19   : > { %502 = sbr.rel (%p499_p10) target bundleno = 1272 (0x4f8), region = 64  ;;  %p582_p12 = scmp.lt.s32.totalorder (!%p499_p10), %s2096_s17, 1 }
  0x1a   : > { %s2277_s23 = scalar_select %p310_p11, %s2088_s15, %s312_s21  }
  0x1b   : > { %p584_p13 = scmp.lt.s32.totalorder (!%p499_p10), %s2280_s22, 3  ;;  %s2767_s0 = sld [smem:[#allocation13_spill]] (!%p499_p10) }
  0x1c   : > { %2766 = sst [smem:[#allocation12_spill]] %s2277_s23  ;;  %s2752_s21 = smov (!%p499_p10), 48  }
  0x1d   : > { %s2768_s3 = sld [smem:[#allocation16_spill]] (!%p499_p10)  ;;  %s2116_s16 = smov (!%p499_p10), 16  }
  0x1e   : > { %s2285_s18 = scalar_select %p582_p12, %s2096_s17, 1  ;;  %vm624_vm0 = vcmask 261120   ;;  %v2110_v17 = vmov 0   ;;  %v654_v25 = vlaneseq  ;;  %v674_v41 = vld [vmem:[%s2728_s4] sm:$0x3]  ;;  %v2111_v42 = vmov 0.0  }
  0x1f   : > { %s2288_s24 = scalar_select %p584_p13, %s2280_s22, 3  ;;  %741 = vmatprep.mubr.bf16.mxu0 %v2110_v17  ;;  %1861 = vmatprep.subr.bf16.mxu1 %v2111_v42  ;;  %v1980_v44 = vld [vmem:[%s2734_s10 + $0x38] sm:$0xff]   ;;  %v1981_v47 = vld [vmem:[%s2734_s10 + $0x30] sm:$0xff]   ;;  %v1982_v54 = vld [vmem:[%s2734_s10 + $0x28] sm:$0xff]   ;;  %vm2118_vm1 = vmmov 0   ;;  %vm762_vm2 = vcmask 130048  }
  0x20   : > { %s1784_s25 = sshll.u32 %s2285_s18, 2  ;;  %s2769_s2 = sld [smem:[#allocation15_spill]]  ;;  %v655_v26 = vshrl.u32 %v654_v25, 7  ;;  %1862 = vmatpush3.bf16.msra.mxu1 %v1980_v44  ;;  %v1983_v60 = vld [vmem:[%s2734_s10 + $0x20] sm:$0xff]   ;;  %1877 = vmatprep.mubr.msk.bf16.mxu1 %vm2118_vm1, %v2111_v42  ;;  %vm802_vm3 = vcmask 121856   ;;  %vm821_vm4 = vcmask 7168  }
  0x21   : > { %s587_s14 = sadd.s32 %s1784_s25, %s2288_s24  ;;  %s2770_s1 = sld [smem:[#allocation14_spill]]  ;;  %1863 = vmatprep.subr.bf16.mxu1 %v2111_v42  ;;  %vm934_vm5 = vcmask 125952  }
  0x22   : > { %s1785_s28 = sshll.u32 %s587_s14, 3  ;;  %v656_v29 = vsub.s32 0, %v655_v26  ;;  %v682_v43 = vsub.s32 1, %v655_v26  ;;  %s2119_s25 = smov 111  }
  0x23   : > { %s589_s23 = scalar_lea.vmem %s2767_s0, %s1785_s28  ;;  %v1974_v14 = vld [vmem:[%s2768_s3 + $0x14] ss:$8 sps:$4 sm:$0xff]   ;;  %v1976_v15 = vld [vmem:[%s2768_s3 + $0x10] ss:$8 sps:$4 sm:$0xff]   ;;  %v1977_v16 = vld [vmem:[%s2768_s3 + $0x4] ss:$8 sps:$4 sm:$0xff]  }
  0x24   : > { %v620_v0 = vld [vmem:[%s589_s23] sm:$0xff]  ;;  %v621_v1 = vld [vmem:[%s589_s23 + $0x8] sm:$0xff]  ;;  %721 = vmatprep.subr.bf16.mxu0 %v1974_v14  ;;  %v679_v45 = vrot.slane %v674_v41, %v656_v29  ;;  %v683_v46 = vrot.slane %v674_v41, %v682_v43  ;;  %1864 = vmatpush3.bf16.msra.mxu1 %v1981_v47  ;;  %s2744_s28 = smov 112   ;;  %s2117_s0 = smov 32  }
  0x25   : > { %v625_v2 = vsel %vm624_vm0, %v620_v0, 0.0  ;;  %v628_v3 = vsel %vm624_vm0, %v621_v1, 0.0  ;;  %722 = vmatpush1.bf16.msra.mxu0 %v1976_v15  ;;  %v1979_v18 = vld [vmem:[%s2768_s3] ss:$8 sps:$4 sm:$0xff]   ;;  %1865 = vmatprep.subr.bf16.mxu1 %v2111_v42  ;;  %v1985_v15 = vld [vmem:[%s2734_s10 + $0x10] sm:$0xff]   ;;  %s2750_s19 = smov 127  }
  0x26   : > { %626 = vadd.xlane.f32.xlu0 %v625_v2  ;;  %723 = vmatprep.subr.bf16.mxu0 %v1977_v16  ;;  %s596_s23 = scalar_lea.vmem %s2769_s2, %s2285_s18 }
  0x27   : > { %v623_v27 = vld [vmem:[%s596_s23] sm:$0x1]  ;;  %s593_s14 = scalar_lea.vmem %s2770_s1, %s2285_s18  ;;  %s2746_s18 = smov 80  }
  0x28   : > { %v652_v28 = vadd.f32 1.0, %v623_v27  ;;  %v1792_v36 = vld [vmem:[%s593_s14] ss:$0 sm:$0xff]  ;;  %s2748_s14 = smov 96   ;;  %1866 = vmatpush3.bf16.msra.mxu1 %v1982_v54  ;;  %s2121_s23 = smov 95  }
  0x29   : > { %724 = vmatpush1.bf16.msra.mxu0 %v1979_v18  ;;  %1867 = vmatprep.subr.bf16.mxu1 %v2111_v42 }
  0x2a   : > { %629 = vadd.xlane.f32.xlu0 %v628_v3  ;;  %v657_v32 = vrot.slane %v652_v28, %v656_v29 }
  0x2c   : > { %1868 = vmatpush3.bf16.msra.mxu1 %v1983_v60 }
  0x2d   : > { %1869 = vmatprep.subr.bf16.mxu1 %v2111_v42 }
  0xaf   : > { %v627_v4 = vpop.xlane.xlu0 %626 }
  0xb0   : > { %v632_v5 = vmul.f32 0.03125, %v627_v4  ;;  %v1799_v4 = vld [vmem:[%s2730_s6] ss:$0 sm:$0xff] }
  0xb2   : > { %v634_v6 = vsub.f32 %v620_v0, %v632_v5 }
  0xb3   : > { %v630_v7 = vpop.xlane.xlu0 %629 }
  0xb4   : > { %v633_v8 = vmul.f32 0.03125, %v630_v7  ;;  %v636_v9 = vmul.f32 %v634_v6, %v634_v6  ;;  %v1984_v7 = vld [vmem:[%s2734_s10 + $0x18] sm:$0xff]  }
  0xb5   : > { %1870 = vmatpush3.bf16.msra.mxu1 %v1984_v7 }
  0xb6   : > { %v635_v10 = vsub.f32 %v621_v1, %v633_v8  ;;  %v638_v11 = vsel %vm624_vm0, %v636_v9, 0.0  ;;  %1871 = vmatprep.subr.bf16.mxu1 %v2111_v42 }
  0xb7   : > { %639 = vadd.xlane.f32.xlu1 %v638_v11 }
  0xb8   : > { %v637_v12 = vmul.f32 %v635_v10, %v635_v10 }
  0xb9   : > { %1872 = vmatpush3.bf16.msra.mxu1 %v1985_v15 }
  0xba   : > { %v641_v13 = vsel %vm624_vm0, %v637_v12, 0.0  ;;  %1873 = vmatprep.subr.bf16.mxu1 %v2111_v42 }
  0xbb   : > { %642 = vadd.xlane.f32.xlu1 %v641_v13 }
 0x140   : > { %v640_v19 = vpop.xlane.xlu1 %639 }
 0x141   : > { %v644_v20 = vmul.f32 0.03125, %v640_v19  ;;  %v2392_v19 = vld [vmem:[%s2729_s5] ss:$0 sm:$0xff] }
 0x143   : > { %v646_v21 = vadd.f32 1e-06, %v644_v20  ;;  %v1986_v20 = vld [vmem:[%s2734_s10 + $0x8] sm:$0xff]  }
 0x144   : > { %v643_v22 = vpop.xlane.xlu1 %642  ;;  %1874 = vmatpush3.bf16.msra.mxu1 %v1986_v20 }
 0x145   : > { %1988 = vrsqrt.f32 %v646_v21  ;;  %v645_v23 = vmul.f32 0.03125, %v643_v22  ;;  %1875 = vmatprep.subr.bf16.mxu1 %v2111_v42  ;;  %v1987_v21 = vld [vmem:[%s2734_s10] sm:$0xff]  }
 0x147   : > { %v647_v24 = vadd.f32 1e-06, %v645_v23 }
 0x148   : > { %1876 = vmatpush3.bf16.msra.mxu1 %v1987_v21 }
 0x149   : > { %1990 = vrsqrt.f32 %v647_v24 }
 0x152   : > { %v1989_v30 = vpop.eup %1988 }
 0x153   : > { %v650_v31 = vmul.f32 %v1989_v30, %v634_v6 }
 0x155   : > { %v659_v35 = vmul.f32 %v657_v32, %v650_v31 }
 0x156   : > { %v1991_v33 = vpop.eup %1990 }
 0x157   : > { %v651_v34 = vmul.f32 %v1991_v33, %v635_v10  ;;  %v667_v38 = vadd.f32 %v1792_v36, %v659_v35 }
 0x159   : > { %v660_v37 = vmul.f32 %v657_v32, %v651_v34 }
 0x15b   : > { %v668_v39 = vadd.f32 %v1792_v36, %v660_v37 }
 0x15d   : > { %v669_v40 = vpack.c.bf16 %v668_v39, %v667_v38 }
 0x15f   : > { %1797 = vmatmul.mubr.msk.bf16.vlgmr.msra.gmra.mxu0 %vm624_vm0, %v669_v40 }
 0x21f   : > { %v743_v48 = vpop.f32.mrf.mxu0 }
 0x220   : > { %v2331_v49 = vadd.f32 %v743_v48, %v679_v45 }
 0x221   : > { %v745_v50 = vpop.f32.mrf.mxu0 }
 0x222   : > { %v2334_v51 = vadd.f32 %v745_v50, %v683_v46  ;;  %v2338_v52 = vmul.f32 %v2331_v49, %v2331_v49  ;;  %v1184_v53 = vmul.f32 0.044715, %v2331_v49  ;;  %v1180_v28 = vmul.f32 0.5, %v2331_v49 }
 0x223   : > { %v747_v55 = vpop.f32.mrf.mxu0 }
 0x224   : > { %v1185_v56 = vmul.f32 0.044715, %v2334_v51  ;;  %v2345_v57 = vadd.f32 %v747_v55, %v679_v45  ;;  %832 = vrot.lane.b32.xlu1 %v2338_v52, %s2748_s14  ;;  %965 = vrot.lane.b32.xlu0 %v2338_v52, %s2744_s28  ;;  %v1188_v58 = vmul.f32 %v1184_v53, %v2331_v49  ;;  %v1181_v31 = vmul.f32 0.5, %v2334_v51 }
 0x225   : > { %v749_v59 = vpop.f32.mrf.mxu0 }
 0x226   : > { %v1189_v61 = vmul.f32 %v1185_v56, %v2334_v51  ;;  %v750_v62 = vadd.f32 %v749_v59, %v683_v46  ;;  %v2358_v63 = vmul.f32 %v2345_v57, %v2345_v57  ;;  %v1186_v0 = vmul.f32 0.044715, %v2345_v57 }
 0x227   : > { %v1192_v1 = vmul.f32 %v1188_v58, %v2331_v49  ;;  %v1182_v29 = vmul.f32 0.5, %v2345_v57 }
 0x228   : > { %v1193_v2 = vmul.f32 %v1189_v61, %v2334_v51  ;;  %v1187_v3 = vmul.f32 0.044715, %v750_v62  ;;  %967 = vrot.lane.b32.xlu1 %v2358_v63, %s2744_s28  ;;  %1054 = vrot.lane.b32.xlu0 %v2338_v52, %s2746_s18  ;;  %v1190_v5 = vmul.f32 %v1186_v0, %v2345_v57  ;;  %v1183_v32 = vmul.f32 0.5, %v750_v62  ;;  %s2754_s28 = sand.u32 1, %s2084_s30  }
 0x229   : > { %v1196_v6 = vadd.f32 %v1192_v1, %v2331_v49 }
 0x22a   : > { %v1191_v8 = vmul.f32 %v1187_v3, %v750_v62  ;;  %v1197_v9 = vadd.f32 %v1193_v2, %v2334_v51  ;;  %v1194_v10 = vmul.f32 %v1190_v5, %v2345_v57 }
 0x22b   : > { %v1200_v11 = vmul.f32 0.7978846, %v1196_v6 }
 0x22c   : > { %v1195_v12 = vmul.f32 %v1191_v8, %v750_v62  ;;  %834 = vrot.lane.b32.xlu1 %v2358_v63, %s2748_s14  ;;  %1074 = vrot.lane.b32.xlu0 %v1799_v4, %s2752_s21  ;;  %v1201_v13 = vmul.f32 0.7978846, %v1197_v9  ;;  %v1198_v14 = vadd.f32 %v1194_v10, %v2345_v57  ;;  %s2123_s14 = smov 113   ;;  %s2126_s21 = smov 65  }
 0x22d   : > { %1992 = vtanh.f32 %v1200_v11 }
 0x22e   : > { %v1199_v16 = vadd.f32 %v1195_v12, %v750_v62  ;;  %1994 = vtanh.f32 %v1201_v13  ;;  %v1202_v17 = vmul.f32 0.7978846, %v1198_v14 }
 0x230   : > { %1056 = vrot.lane.b32.xlu1 %v2358_v63, %s2746_s18  ;;  %v1203_v18 = vmul.f32 0.7978846, %v1199_v16  ;;  %1996 = vtanh.f32 %v1202_v17  ;;  %s2122_s18 = smov 97  }
 0x232   : > { %1998 = vtanh.f32 %v1203_v18 }
 0x234   : > { %985 = vrot.lane.b32.xlu1 %v2392_v19, %s2116_s16 }
 0x238   : > { %857 = vrot.lane.b32.xlu1 %v1799_v4, %s2117_s0 }
 0x23a   : > { %v1993_v22 = vpop.eup %1992 }
 0x23b   : > { %v1995_v23 = vpop.eup %1994  ;;  %v1208_v24 = vadd.f32 1.0, %v1993_v22 }
 0x23c   : > { %v1209_v26 = vadd.f32 1.0, %v1995_v23 }
 0x23d   : > { %v1997_v25 = vpop.eup %1996  ;;  %v1212_v34 = vmul.f32 %v1208_v24, %v1180_v28 }
 0x23e   : > { %v1210_v30 = vadd.f32 1.0, %v1997_v25  ;;  %v1213_v36 = vmul.f32 %v1209_v26, %v1181_v31 }
 0x23f   : > { %v1999_v27 = vpop.eup %1998 }
 0x240   : > { %v1211_v33 = vadd.f32 1.0, %v1999_v27  ;;  %v1214_v35 = vmul.f32 %v1210_v30, %v1182_v29 }
 0x242   : > { %v1215_v37 = vmul.f32 %v1211_v33, %v1183_v32  ;;  %v1216_v38 = vpack.c.bf16 %v1214_v35, %v1212_v34 }
 0x244   : > { %v1217_v39 = vpack.c.bf16 %v1215_v37, %v1213_v36  ;;  %1236 = vrot.lane.b32.xlu0 %v1216_v38, %s2117_s0 }
 0x246   : > { %1238 = vrot.lane.b32.xlu1 %v1217_v39, %s2117_s0  ;;  %v766_v39 = vsel %vm762_vm2, %v2358_v63, 0.0 }
 0x296   : > { %v833_v40 = vpop.permute.xlu1 %832  ;;  %v966_v41 = vpop.permute.xlu0 %965 }
 0x297   : > { %v971_v42 = vsel %vm762_vm2, %v966_v41, 0.0  ;;  %v838_v45 = vsel %vm762_vm2, %v833_v40, 0.0  ;;  %v763_v40 = vsel %vm762_vm2, %v2338_v52, 0.0 }
 0x298   : > { %972 = vadd.xlane.f32.xlu0 %v971_v42 }
 0x29a   : > { %v968_v43 = vpop.permute.xlu1 %967  ;;  %v1055_v46 = vpop.permute.xlu0 %1054 }
 0x29b   : > { %v974_v44 = vsel %vm762_vm2, %v968_v43, 0.0  ;;  %v1060_v48 = vsel %vm762_vm2, %v1055_v46, 0.0 }
 0x29c   : > { %975 = vadd.xlane.f32.xlu1 %v974_v44  ;;  %839 = vadd.xlane.f32.xlu0 %v838_v45 }
 0x29e   : > { %v835_v47 = vpop.permute.xlu1 %834  ;;  %v2417_v55 = vpop.permute.xlu0 %1074 }
 0x29f   : > { %v841_v53 = vsel %vm762_vm2, %v835_v47, 0.0 }
 0x2a0   : > { %1061 = vadd.xlane.f32.xlu0 %v1060_v48 }
 0x2a2   : > { %v1057_v50 = vpop.permute.xlu1 %1056 }
 0x2a3   : > { %v1063_v51 = vsel %vm762_vm2, %v1057_v50, 0.0 }
 0x2a4   : > { %1064 = vadd.xlane.f32.xlu1 %v1063_v51  ;;  %842 = vadd.xlane.f32.xlu0 %v841_v53 }
 0x2a6   : > { %v986_v54 = vpop.permute.xlu1 %985 }
 0x2aa   : > { %v858_v56 = vpop.permute.xlu1 %857 }
 0x2b6   : > { %v1237_v58 = vpop.permute.xlu0 %1236 }
 0x2b8   : > { %v1239_v59 = vpop.permute.xlu1 %1238 }
 0x2b9   : > { %v1241_v60 = vsel %vm624_vm0, %v1237_v58, %v1239_v59 }
 0x2ba   : > { %1878 = vmatmul.mubr.bf16.vlgmr.msra.gmra.mxu1 %v1241_v60 }
 0x321   : > { %v973_v61 = vpop.xlane.xlu0 %972 }
 0x322   : > { %v977_v62 = vmul.f32 0.0625, %v973_v61 }
 0x324   : > { %v979_v0 = vadd.f32 1e-06, %v977_v62 }
 0x325   : > { %v976_v1 = vpop.xlane.xlu1 %975  ;;  %v840_v2 = vpop.xlane.xlu0 %839 }
 0x326   : > { %2000 = vrsqrt.f32 %v979_v0  ;;  %v978_v3 = vmul.f32 0.0625, %v976_v1  ;;  %v844_v4 = vmul.f32 0.0625, %v840_v2 }
 0x328   : > { %v980_v5 = vadd.f32 1e-06, %v978_v3  ;;  %v846_v6 = vadd.f32 1e-06, %v844_v4 }
 0x329   : > { %v1062_v7 = vpop.xlane.xlu0 %1061 }
 0x32a   : > { %2002 = vrsqrt.f32 %v980_v5  ;;  %v1066_v11 = vmul.f32 0.0625, %v1062_v7 }
 0x32b   : > { %2004 = vrsqrt.f32 %v846_v6 }
 0x32c   : > { %v1068_v15 = vadd.f32 1e-06, %v1066_v11 }
 0x32d   : > { %v843_v8 = vpop.xlane.xlu0 %842  ;;  %v1065_v13 = vpop.xlane.xlu1 %1064 }
 0x32e   : > { %v845_v9 = vmul.f32 0.0625, %v843_v8  ;;  %v1067_v18 = vmul.f32 0.0625, %v1065_v13 }
 0x330   : > { %v847_v10 = vadd.f32 1e-06, %v845_v9  ;;  %v1069_v24 = vadd.f32 1e-06, %v1067_v18 }
 0x332   : > { %2006 = vrsqrt.f32 %v847_v10 }
 0x333   : > { %v2001_v12 = vpop.eup %2000  ;;  %2008 = vrsqrt.f32 %v1068_v15 }
 0x334   : > { %v983_v14 = vmul.f32 %v2001_v12, %v2331_v49  ;;  %2010 = vrsqrt.f32 %v1069_v24 }
 0x336   : > { %v2422_v16 = vmul.f32 %v986_v54, %v983_v14 }
 0x337   : > { %v2003_v17 = vpop.eup %2002 }
 0x338   : > { %v2005_v20 = vpop.eup %2004  ;;  %1000 = vrot.lane.b32.xlu1 %v2422_v16, %s2119_s25  ;;  %v984_v21 = vmul.f32 %v2003_v17, %v2345_v57 }
 0x339   : > { %v850_v23 = vmul.f32 %v2005_v20, %v2331_v49 }
 0x33a   : > { %v2426_v22 = vmul.f32 %v986_v54, %v984_v21 }
 0x33b   : > { %v2432_v25 = vmul.f32 %v858_v56, %v850_v23 }
 0x33c   : > { %1002 = vrot.lane.b32.xlu0 %v2426_v22, %s2119_s25  ;;  %1006 = vrot.lane.b32.xlu1 %v2422_v16, %s2750_s19 }
 0x33f   : > { %v2007_v26 = vpop.eup %2006 }
 0x340   : > { %1008 = vrot.lane.b32.xlu0 %v2426_v22, %s2750_s19  ;;  %874 = vrot.lane.b32.xlu1 %v2432_v25, %s2121_s23  ;;  %v851_v27 = vmul.f32 %v2007_v26, %v2345_v57  ;;  %v2009_v29 = vpop.eup %2008  ;;  %s2124_s19 = smov 79  }
 0x341   : > { %v1072_v30 = vmul.f32 %v2009_v29, %v2331_v49  ;;  %v2011_v31 = vpop.eup %2010 }
 0x342   : > { %v2438_v28 = vmul.f32 %v858_v56, %v851_v27  ;;  %v1073_v33 = vmul.f32 %v2011_v31, %v2345_v57 }
 0x343   : > { %v2449_v32 = vmul.f32 %v2417_v55, %v1072_v30 }
 0x344   : > { %880 = vrot.lane.b32.xlu1 %v2432_v25, %s2119_s25  ;;  %876 = vrot.lane.b32.xlu0 %v2438_v28, %s2121_s23  ;;  %v2456_v34 = vmul.f32 %v2417_v55, %v1073_v33 }
 0x348   : > { %1026 = vrot.lane.b32.xlu1 %v2422_v16, %s2122_s18  ;;  %882 = vrot.lane.b32.xlu0 %v2438_v28, %s2119_s25  ;;  %s2125_s25 = smov 81  }
 0x34c   : > { %1032 = vrot.lane.b32.xlu1 %v2422_v16, %s2123_s14  ;;  %1028 = vrot.lane.b32.xlu0 %v2426_v22, %s2122_s18 }
 0x350   : > { %1089 = vrot.lane.b32.xlu1 %v2449_v32, %s2124_s19  ;;  %1034 = vrot.lane.b32.xlu0 %v2426_v22, %s2123_s14 }
 0x354   : > { %1095 = vrot.lane.b32.xlu1 %v2449_v32, %s2121_s23  ;;  %1091 = vrot.lane.b32.xlu0 %v2456_v34, %s2124_s19  ;;  %s2471_s19 = sshll.u32 %s2754_s28, 4 }
 0x358   : > { %900 = vrot.lane.b32.xlu1 %v2432_v25, %s2125_s25  ;;  %1097 = vrot.lane.b32.xlu0 %v2456_v34, %s2121_s23  ;;  %s2474_s23 = scalar_lea.vmem [#allocation5], %s2471_s19 }
 0x35c   : > { %906 = vrot.lane.b32.xlu1 %v2432_v25, %s2122_s18  ;;  %902 = vrot.lane.b32.xlu0 %v2438_v28, %s2125_s25 }
 0x360   : > { %1115 = vrot.lane.b32.xlu1 %v2449_v32, %s2126_s21  ;;  %908 = vrot.lane.b32.xlu0 %v2438_v28, %s2122_s18  ;;  %s2485_s18 = sshll.u32 %s2288_s24, 3  ;;  %s2771_s24 = smov 48  }
 0x361   : > { %s601_s28 = scalar_lea.vmem %s2731_s7, %s2485_s18 }
 0x362   : > { %v2491_v41 = vld [vmem:[%s601_s28 + $0x8] sm:$0xff]  ;;  %v2495_v42 = vld [vmem:[%s601_s28] sm:$0xff]  ;;  %s607_s28 = scalar_lea.vmem %s2732_s8, %s2485_s18 }
 0x363   : > { %v2511_v63 = vld [vmem:[%s607_s28] sm:$0xff]  ;;  %v2515_v47 = vld [vmem:[%s607_s28 + $0x8] sm:$0xff]  ;;  %s613_s28 = scalar_lea.vmem %s2733_s9, %s2485_s18  ;;  %s2128_s18 = smov 1  }
 0x364   : > { %1121 = vrot.lane.b32.xlu1 %v2449_v32, %s2125_s25  ;;  %1117 = vrot.lane.b32.xlu0 %v2456_v34, %s2126_s21  ;;  %v2530_v0 = vld [vmem:[%s613_s28] sm:$0xff]  ;;  %v2535_v6 = vld [vmem:[%s613_s28 + $0x8] sm:$0xff]  ;;  %s2129_s21 = smov 64   ;;  %s2775_s28 = smov 112  }
 0x368   : > { %1123 = vrot.lane.b32.xlu0 %v2456_v34, %s2125_s25  ;;  %s2774_s25 = smov 80  }
 0x37a   : > { %v1325_v35 = vpop.f32.mrf.mxu1 }
 0x37b   : > { %1332 = vst.msk [vmem:[%s2474_s23] sm:$0xff] %vm624_vm0, %v1325_v35 }
 0x37c   : > { %v1879_v36 = vpop.f32.mrf.mxu1 }
 0x37e   : > { %v1328_v37 = vpop.f32.mrf.mxu1 }
 0x37f   : > { %1333 = vst.msk [vmem:[%s2474_s23 + $0x8] sm:$0xff] %vm624_vm0, %v1328_v37 }
 0x380   : > { %v1880_v38 = vpop.f32.mrf.mxu1 }
 0x387   : > { %767 = vadd.xlane.f32.xlu0 %v766_v39 }
 0x388   : > { %764 = vadd.xlane.f32.xlu1 %v763_v40 }
 0x399   : > { %992 = vrot.lane.b32.xlu1 %v2491_v41, %s2116_s16 }
 0x39d   : > { %864 = vrot.lane.b32.xlu1 %v2495_v42, %s2117_s0  ;;  %990 = vrot.lane.b32.xlu0 %v2495_v42, %s2116_s16 }
 0x3a1   : > { %1079 = vrot.lane.b32.xlu1 %v2495_v42, %s2771_s24  ;;  %866 = vrot.lane.b32.xlu0 %v2491_v41, %s2117_s0 }
 0x3a5   : > { %1081 = vrot.lane.b32.xlu0 %v2491_v41, %s2771_s24 }
 0x3aa   : > { %v1001_v52 = vpop.permute.xlu1 %1000 }
 0x3ae   : > { %v1007_v43 = vpop.permute.xlu1 %1006  ;;  %v1003_v44 = vpop.permute.xlu0 %1002 }
 0x3af   : > { %v1012_v45 = vsel %vm802_vm3, %v1001_v52, %v1007_v43 }
 0x3b0   : > { %v1014_v46 = vmul.f32 %v1012_v45, %v2511_v63 }
 0x3b2   : > { %v875_v48 = vpop.permute.xlu1 %874  ;;  %v1009_v50 = vpop.permute.xlu0 %1008  ;;  %1018 = vrot.lane.b32.xlu1 %v1014_v46, %s2116_s16 }
 0x3b3   : > { %v1013_v51 = vsel %vm802_vm3, %v1003_v44, %v1009_v50 }
 0x3b4   : > { %v1015_v53 = vmul.f32 %v1013_v51, %v2515_v47 }
 0x3b6   : > { %v881_v54 = vpop.permute.xlu1 %880  ;;  %1020 = vrot.lane.b32.xlu0 %v1015_v53, %s2116_s16  ;;  %v877_v56 = vpop.permute.xlu0 %876 }
 0x3b7   : > { %v886_v55 = vsel %vm802_vm3, %v875_v48, %v881_v54 }
 0x3b8   : > { %v888_v58 = vmul.f32 %v886_v55, %v2511_v63 }
 0x3ba   : > { %v1027_v59 = vpop.permute.xlu1 %1026  ;;  %892 = vrot.lane.b32.xlu1 %v888_v58, %s2117_s0  ;;  %v883_v60 = vpop.permute.xlu0 %882 }
 0x3bb   : > { %v887_v61 = vsel %vm802_vm3, %v877_v56, %v883_v60 }
 0x3bc   : > { %v889_v62 = vmul.f32 %v887_v61, %v2515_v47 }
 0x3be   : > { %v1033_v1 = vpop.permute.xlu1 %1032  ;;  %894 = vrot.lane.b32.xlu0 %v889_v62, %s2117_s0  ;;  %v1029_v3 = vpop.permute.xlu0 %1028 }
 0x3bf   : > { %v1038_v2 = vsel %vm821_vm4, %v1027_v59, %v1033_v1  ;;  %v1847_v1 = vpack.c.bf16 %v2345_v57, %v2345_v57 }
 0x3c0   : > { %v1040_v4 = vmul.f32 %v1038_v2, %v2530_v0  ;;  %v1846_v2 = vpack.c.bf16 %v2331_v49, %v2331_v49 }
 0x3c2   : > { %v1090_v5 = vpop.permute.xlu1 %1089  ;;  %1044 = vrot.lane.b32.xlu1 %v1040_v4, %s2116_s16  ;;  %v1035_v7 = vpop.permute.xlu0 %1034 }
 0x3c3   : > { %v1039_v8 = vsel %vm821_vm4, %v1029_v3, %v1035_v7 }
 0x3c4   : > { %v1041_v9 = vmul.f32 %v1039_v8, %v2535_v6 }
 0x3c6   : > { %v1096_v10 = vpop.permute.xlu1 %1095  ;;  %1046 = vrot.lane.b32.xlu0 %v1041_v9, %s2116_s16  ;;  %v1092_v12 = vpop.permute.xlu0 %1091  ;;  %s2772_s16 = smov 127  }
 0x3c7   : > { %v1101_v11 = vsel %vm802_vm3, %v1090_v5, %v1096_v10 }
 0x3c8   : > { %v1103_v13 = vmul.f32 %v1101_v11, %v2511_v63 }
 0x3ca   : > { %v901_v14 = vpop.permute.xlu1 %900  ;;  %1107 = vrot.lane.b32.xlu1 %v1103_v13, %s2771_s24  ;;  %v1098_v15 = vpop.permute.xlu0 %1097 }
 0x3cb   : > { %v1102_v17 = vsel %vm802_vm3, %v1092_v12, %v1098_v15 }
 0x3cc   : > { %v1104_v18 = vmul.f32 %v1102_v17, %v2515_v47 }
 0x3ce   : > { %v907_v20 = vpop.permute.xlu1 %906  ;;  %1109 = vrot.lane.b32.xlu0 %v1104_v18, %s2771_s24  ;;  %v903_v23 = vpop.permute.xlu0 %902 }
 0x3cf   : > { %v912_v21 = vsel %vm821_vm4, %v901_v14, %v907_v20 }
 0x3d0   : > { %v914_v24 = vmul.f32 %v912_v21, %v2530_v0 }
 0x3d2   : > { %v1116_v26 = vpop.permute.xlu1 %1115  ;;  %918 = vrot.lane.b32.xlu1 %v914_v24, %s2117_s0  ;;  %v909_v27 = vpop.permute.xlu0 %908 }
 0x3d3   : > { %v913_v29 = vsel %vm821_vm4, %v903_v23, %v909_v27 }
 0x3d4   : > { %v915_v30 = vmul.f32 %v913_v29, %v2535_v6 }
 0x3d6   : > { %v1122_v31 = vpop.permute.xlu1 %1121  ;;  %920 = vrot.lane.b32.xlu0 %v915_v30, %s2117_s0  ;;  %v1118_v35 = vpop.permute.xlu0 %1117  ;;  %s2127_s0 = smov 15  }
 0x3d7   : > { %v1127_v33 = vsel %vm821_vm4, %v1116_v26, %v1122_v31 }
 0x3d8   : > { %v1129_v36 = vmul.f32 %v1127_v33, %v2530_v0 }
 0x3da   : > { %1133 = vrot.lane.b32.xlu1 %v1129_v36, %s2771_s24  ;;  %v1124_v37 = vpop.permute.xlu0 %1123 }
 0x3db   : > { %v1128_v38 = vsel %vm821_vm4, %v1118_v35, %v1124_v37 }
 0x3dc   : > { %v1130_v39 = vmul.f32 %v1128_v38, %v2535_v6 }
 0x3de   : > { %1135 = vrot.lane.b32.xlu0 %v1130_v39, %s2771_s24 }
 0x410   : > { %v768_v40 = vpop.xlane.xlu0 %767 }
 0x411   : > { %v765_v52 = vpop.xlane.xlu1 %764  ;;  %v771_v43 = vmul.f32 0.0625, %v768_v40 }
 0x412   : > { %v770_v44 = vmul.f32 0.0625, %v765_v52 }
 0x413   : > { %v773_v45 = vadd.f32 1e-06, %v771_v43 }
 0x414   : > { %v772_v46 = vadd.f32 1e-06, %v770_v44  ;;  %v991_v58 = vpop.permute.xlu0 %990 }
 0x415   : > { %2012 = vrsqrt.f32 %v773_v45  ;;  %v993_v51 = vpop.permute.xlu1 %992  ;;  %v996_v15 = vmul.f32 %v991_v58, %v2422_v16 }
 0x416   : > { %2014 = vrsqrt.f32 %v772_v46  ;;  %v997_v26 = vmul.f32 %v993_v51, %v2426_v22 }
 0x418   : > { %v867_v60 = vpop.permute.xlu0 %866 }
 0x419   : > { %v865_v59 = vpop.permute.xlu1 %864 }
 0x41a   : > { %v870_v9 = vmul.f32 %v865_v59, %v2432_v25 }
 0x41c   : > { %v1082_v62 = vpop.permute.xlu0 %1081 }
 0x41d   : > { %v1080_v61 = vpop.permute.xlu1 %1079 }
 0x41e   : > { %v1085_v18 = vmul.f32 %v1080_v61, %v2449_v32 }
 0x422   : > { %v2013_v48 = vpop.eup %2012 }
 0x423   : > { %v2015_v50 = vpop.eup %2014  ;;  %v777_v53 = vmul.f32 %v2013_v48, %v2345_v57  ;;  %v871_v57 = vmul.f32 %v867_v60, %v2438_v28  ;;  %v1086_v28 = vmul.f32 %v1082_v62, %v2456_v34 }
 0x424   : > { %v776_v54 = vmul.f32 %v2015_v50, %v2331_v49 }
 0x425   : > { %v2562_v55 = vmul.f32 %v2392_v19, %v777_v53 }
 0x426   : > { %v2565_v56 = vmul.f32 %v2392_v19, %v776_v54  ;;  %v1019_v19 = vpop.permute.xlu1 %1018 }
 0x427   : > { %792 = vrot.lane.b32.xlu0 %v2562_v55, %s2772_s16  ;;  %v1024_v20 = vadd.f32 %v1019_v19, %v996_v15  ;;  %v787_v54 = vmul.f32 %v2562_v55, %v2491_v41 }
 0x428   : > { %790 = vrot.lane.b32.xlu1 %v2565_v56, %s2772_s16  ;;  %v1021_v4 = vpop.permute.xlu0 %1020  ;;  %v786_v59 = vmul.f32 %v2565_v56, %v2495_v42  ;;  %s561_s16 = scalar_lea.vmem [#allocation2], %s2471_s19 }
 0x429   : > { %v1025_v31 = vadd.f32 %v1021_v4, %v997_v26 }
 0x42b   : > { %798 = vrot.lane.b32.xlu0 %v2562_v55, %s2127_s0 }
 0x42c   : > { %796 = vrot.lane.b32.xlu1 %v2565_v56, %s2127_s0  ;;  %v893_v3 = vpop.permute.xlu1 %892  ;;  %s2620_s0 = scalar_lea.vmem [#allocation3], %s2471_s19 }
 0x42d   : > { %v898_v11 = vadd.f32 %v893_v3, %v870_v9 }
 0x42f   : > { %811 = vrot.lane.b32.xlu0 %v2562_v55, %s2123_s14 }
 0x430   : > { %809 = vrot.lane.b32.xlu1 %v2565_v56, %s2123_s14  ;;  %v895_v7 = vpop.permute.xlu0 %894  ;;  %s2773_s14 = smov 96  }
 0x431   : > { %v899_v17 = vadd.f32 %v895_v7, %v871_v57 }
 0x433   : > { %817 = vrot.lane.b32.xlu0 %v2562_v55, %s2128_s18 }
 0x434   : > { %815 = vrot.lane.b32.xlu1 %v2565_v56, %s2128_s18  ;;  %v1045_v5 = vpop.permute.xlu1 %1044 }
 0x435   : > { %v1050_v24 = vadd.f32 %v1045_v5, %v1024_v20 }
 0x437   : > { %959 = vrot.lane.b32.xlu0 %v1847_v1, %s2129_s21  ;;  %v1052_v16 = vmul.f32 0.25, %v1050_v24 }
 0x438   : > { %957 = vrot.lane.b32.xlu1 %v1846_v2, %s2129_s21  ;;  %v1047_v10 = vpop.permute.xlu0 %1046  ;;  %s1829_s21 = sshll.u32 (%p2259_p3), %s2096_s17, 3 }
 0x439   : > { %v1051_v32 = vadd.f32 %v1047_v10, %v1025_v31  ;;  %v1848_v38 = vpack.c.bf16 %v1052_v16, %v1052_v16 }
 0x43b   : > { %v1053_v39 = vmul.f32 0.25, %v1051_v32 }
 0x43c   : > { %v1108_v8 = vpop.permute.xlu1 %1107 }
 0x43d   : > { %v1113_v25 = vadd.f32 %v1108_v8, %v1085_v18  ;;  %v1849_v22 = vpack.c.bf16 %v1053_v39, %v1053_v39 }
 0x440   : > { %v1110_v13 = vpop.permute.xlu0 %1109 }
 0x441   : > { %v1114_v35 = vadd.f32 %v1110_v13, %v1086_v28 }
 0x444   : > { %v919_v12 = vpop.permute.xlu1 %918 }
 0x445   : > { %v924_v14 = vadd.f32 %v919_v12, %v898_v11 }
 0x447   : > { %v1844_v49 = vpack.c.bf16 %v924_v14, %v924_v14 }
 0x448   : > { %v921_v21 = vpop.permute.xlu0 %920 }
 0x449   : > { %943 = vrot.lane.b32.xlu1 %v1844_v49, %s2773_s14  ;;  %v925_v23 = vadd.f32 %v921_v21, %v899_v17 }
 0x44b   : > { %v1845_v27 = vpack.c.bf16 %v925_v23, %v925_v23 }
 0x44c   : > { %v1134_v29 = vpop.permute.xlu1 %1133 }
 0x44d   : > { %v1139_v30 = vadd.f32 %v1134_v29, %v1113_v25  ;;  %945 = vrot.lane.b32.xlu0 %v1845_v27, %s2773_s14  ;;  %s1356_s14 = sadd.s32 (%p2259_p3), %s1829_s21, %s2280_s22 }
 0x44f   : > { %v1850_v33 = vpack.c.bf16 %v1139_v30, %v1139_v30 }
 0x450   : > { %v1136_v36 = vpop.permute.xlu0 %1135 }
 0x451   : > { %1162 = vrot.lane.b32.xlu1 %v1850_v33, %s2774_s25  ;;  %v1140_v37 = vadd.f32 %v1136_v36, %v1114_v35 }
 0x453   : > { %v1851_v40 = vpack.c.bf16 %v1140_v37, %v1140_v37 }
 0x455   : > { %1147 = vrot.lane.b32.xlu1 %v1848_v38, %s2775_s28  ;;  %1164 = vrot.lane.b32.xlu0 %v1851_v40, %s2774_s25  ;;  %s1830_s25 = sshll.u32 (%p2259_p3), %s1356_s14, 2 }
 0x456   : > { %s1358_s2 = scalar_lea.vmem (%p2259_p3), %s2735_s11, %s1830_s25 }
 0x459   : > { %1171 = vrot.lane.b32.xlu1 %v1846_v2, %s2771_s24  ;;  %1149 = vrot.lane.b32.xlu0 %v1849_v22, %s2775_s28 }
 0x45d   : > { %1173 = vrot.lane.b32.xlu0 %v1847_v1, %s2771_s24  ;;  %s2610_s24 = scalar_lea.vmem [#allocation4], %s2471_s19  ;;  %s2776_s19 = sand.u32 1, %s2084_s30  }
 0x45e   : > { %s2638_s18 = scalar_lea.sflag [#allocation6], %s2776_s19 }
 0x499   : > { %v793_v34 = vpop.permute.xlu0 %792 }
 0x49a   : > { %v791_v52 = vpop.permute.xlu1 %790 }
 0x49d   : > { %v799_v43 = vpop.permute.xlu0 %798 }
 0x49e   : > { %v797_v44 = vpop.permute.xlu1 %796  ;;  %v804_v45 = vsel %vm802_vm3, %v793_v34, %v799_v43 }
 0x49f   : > { %v803_v46 = vsel %vm802_vm3, %v791_v52, %v797_v44  ;;  %v806_v51 = vmul.f32 %v804_v45, %v2515_v47 }
 0x4a0   : > { %v805_v53 = vmul.f32 %v803_v46, %v2511_v63 }
 0x4a1   : > { %v812_v48 = vpop.permute.xlu0 %811  ;;  %v808_v19 = vadd.f32 %v806_v51, %v787_v54 }
 0x4a2   : > { %v810_v50 = vpop.permute.xlu1 %809  ;;  %v807_v47 = vadd.f32 %v805_v53, %v786_v59 }
 0x4a5   : > { %v818_v58 = vpop.permute.xlu0 %817 }
 0x4a6   : > { %v823_v60 = vsel %vm821_vm4, %v812_v48, %v818_v58  ;;  %v816_v61 = vpop.permute.xlu1 %815 }
 0x4a7   : > { %v825_v62 = vmul.f32 %v823_v60, %v2535_v6  ;;  %v822_v1 = vsel %vm821_vm4, %v810_v50, %v816_v61 }
 0x4a8   : > { %v824_v63 = vmul.f32 %v822_v1, %v2530_v0 }
 0x4a9   : > { %v827_v2 = vadd.f32 %v825_v62, %v808_v19  ;;  %v960_v41 = vpop.permute.xlu0 %959 }
 0x4aa   : > { %v826_v55 = vadd.f32 %v824_v63, %v807_v47  ;;  %964 = vst.msk [vmem:[%s2610_s24 + $0x4] sm:$0xf] %vm934_vm5, %v960_v41  ;;  %v958_v42 = vpop.permute.xlu1 %957 }
 0x4ab   : > { %v829_v56 = vmul.f32 0.25, %v827_v2  ;;  %963 = vst.msk [vmem:[%s2610_s24] sm:$0xf] %vm934_vm5, %v958_v42 }
 0x4ac   : > { %v828_v6 = vmul.f32 0.25, %v826_v55 }
 0x4ad   : > { %v1843_v3 = vpack.c.bf16 %v829_v56, %v829_v56 }
 0x4ae   : > { %v1842_v4 = vpack.c.bf16 %v828_v6, %v828_v6 }
 0x4af   : > { %936 = vst.msk [vmem:[%s561_s16 + $0x4] sm:$0xf] %vm934_vm5, %v1843_v3 }
 0x4b0   : > { %935 = vst.msk [vmem:[%s561_s16] sm:$0xf] %vm934_vm5, %v1842_v4 }
 0x4b7   : > { %v1375_v13 = vld [vmem:[%s561_s16] sm:$0xff] (%p2259_p3)  }
 0x4b8   : > { %1376 = vst [vmem:[%s1358_s2] sm:$0xff] (%p2259_p3), %v1375_v13  }
 0x4bb   : > { %v944_v0 = vpop.permute.xlu1 %943 }
 0x4bc   : > { %949 = vst.msk [vmem:[%s2620_s0] sm:$0xf] %vm934_vm5, %v944_v0 }
 0x4bf   : > { %v946_v5 = vpop.permute.xlu0 %945 }
 0x4c0   : > { %950 = vst.msk [vmem:[%s2620_s0 + $0x4] sm:$0xf] %vm934_vm5, %v946_v5 }
 0x4c3   : > { %v1163_v7 = vpop.permute.xlu1 %1162 }
 0x4c4   : > { %1812 = vst.msk [vmem:[%s2620_s0 + $0x8] sm:$0xf] %vm934_vm5, %v1163_v7 }
 0x4c7   : > { %v1148_v8 = vpop.permute.xlu1 %1147  ;;  %v1165_v9 = vpop.permute.xlu0 %1164 }
 0x4c8   : > { %1808 = vst.msk [vmem:[%s561_s16 + $0x8] sm:$0xf] %vm934_vm5, %v1148_v8  ;;  %1813 = vst.msk [vmem:[%s2620_s0 + $0xc] sm:$0xf] %vm934_vm5, %v1165_v9 }
 0x4cb   : > { %v1172_v10 = vpop.permute.xlu1 %1171  ;;  %v1150_v11 = vpop.permute.xlu0 %1149 }
 0x4cc   : > { %1814 = vst.msk [vmem:[%s2610_s24 + $0x8] sm:$0xf] %vm934_vm5, %v1172_v10  ;;  %1809 = vst.msk [vmem:[%s561_s16 + $0xc] sm:$0xf] %vm934_vm5, %v1150_v11  ;;  %1353 = sbr.rel (!%p2259_p3) target bundleno = 1237 (0x4d5), region = 68 }
 0x4cf   : > { %v1174_v12 = vpop.permute.xlu0 %1173 }
 0x4d0   : > { %1815 = vst.msk [vmem:[%s2610_s24 + $0xc] sm:$0xf] %vm934_vm5, %v1174_v12 }
 0x4d3   : > { %v1379_v14 = vld [vmem:[%s561_s16 + $0x8] sm:$0xff]  }
 0x4d4   : > { %1380 = vst [vmem:[%s1358_s2 + $0x10] sm:$0xff] %v1379_v14  }
 0x4d5 PF: > { %1414 = sbr.rel (!%p2259_p3) target bundleno = 1242 (0x4da), region = 109  ;;  %s1832_s19 = sshll.u32 (%p2259_p3), %s2096_s17, 3  ;;  %v1436_v57 = vld [vmem:[%s2620_s0] sm:$0xff] (%p2259_p3)   ;;  %v1440_v15 = vld [vmem:[%s2620_s0 + $0x8] sm:$0xff] (%p2259_p3)  }
 0x4d6   : > { %s1417_s3 = sadd.s32 (%p2259_p3), %s1832_s19, %s2280_s22 }
 0x4d7   : > { %s1833_s16 = sshll.u32 (%p2259_p3), %s1417_s3, 2 }
 0x4d8   : > { %s1419_s1 = scalar_lea.vmem (%p2259_p3), %s2736_s12, %s1833_s16 }
 0x4d9   : > { %1437 = vst [vmem:[%s1419_s1] sm:$0xff] (%p2259_p3), %v1436_v57   ;;  %1441 = vst [vmem:[%s1419_s1 + $0x10] sm:$0xff] (%p2259_p3), %v1440_v15  }
 0x4da PF: > { %1475 = sbr.rel (!%p2259_p3) target bundleno = 1247 (0x4df), region = 150  ;;  %s1835_s2 = sshll.u32 (%p2259_p3), %s2096_s17, 3  ;;  %v1497_v49 = vld [vmem:[%s2610_s24] sm:$0xff] (%p2259_p3)  }
 0x4db   : > { %s1478_s25 = sadd.s32 (%p2259_p3), %s1835_s2, %s2280_s22  ;;  %v1501_v17 = vld [vmem:[%s2610_s24 + $0x8] sm:$0xff] (%p2259_p3)  }
 0x4dc   : > { %s1836_s0 = sshll.u32 (%p2259_p3), %s1478_s25, 2 }
 0x4dd   : > { %s1480_s19 = scalar_lea.vmem (%p2259_p3), %s2737_s13, %s1836_s0 }
 0x4de   : > { %1498 = vst [vmem:[%s1480_s19] sm:$0xff] (%p2259_p3), %v1497_v49   ;;  %1502 = vst [vmem:[%s1480_s19 + $0x10] sm:$0xff] (%p2259_p3), %v1501_v17  }
 0x4df PF: > { %s1838_s16 = sshll.u32 %s2096_s17, 2  ;;  %s1545_s21 = sshll.u32 %s2474_s23, 4  ;;  %s2668_s21 = int_to_ptr.vmem [resolvable:$true] %s1545_s21 }
 0x4e0   : > { %s1542_s14 = sadd.s32 %s1838_s16, %s2280_s22  ;;  %s2777_s25 = sld [smem:[#allocation17_spill]] }
 0x4e1   : > { %s1839_s24 = sshll.u32 %s1542_s14, 7  ;;  %s2016_s3 = scalar_lea.vmem %s2668_s21, 256 }
 0x4e2   : > { %p2017_p0 = scmp.ne.s32.totalorder %s2668_s21, %s2016_s3  ;;  %s2130_s28 = smov [#allocation5]  }
 0x4e3   : > { %s2020_s17 = sshll.u32 %s2130_s28, 4  ;;  %s2021_s17 = int_to_ptr.vmem [resolvable:$false] %s2020_s17 }
 0x4e4   : > { %p2018_p1 = pnand %p2017_p0, %p2259_p3  ;;  %s2022_s22 = scalar_lea.vmem %s2021_s17, 512 }
 0x4e5   : > { %p2023_p4 = scmp.lt.s32.totalorder %s2668_s21, %s2021_s17  ;;  %p2024_p5 = scmp.lt.s32.totalorder %s2022_s22, %s2016_s3 }
 0x4e6   : > { %s2673_s0 = scalar_lea.hbm %s2777_s25, %s1839_s24  ;;  %p2019_p2 = pneg %p2018_p1 }
 0x4e7   : > { %p2025_p6 = por %p2024_p5, %p2023_p4 }
 0x4e9   : > { %p2026_p7 = pnand %p2025_p6, %p2019_p2 }
 0x4eb   : > { %2029 = shalt.err (!%p2026_p7)
}
 0x4ec   : > { %s2030_s23 = scalar_lea.hbm %s2673_s0, 256  ;;  %s2034_s14 = scalar_lea.hbm %s2777_s25, 1024 }
 0x4ed   : > { %p2031_p9 = scmp.ne.s32.totalorder %s2673_s0, %s2030_s23  ;;  %p2035_p12 = scmp.lt.s32.totalorder %s2673_s0, %s2777_s25 }
 0x4ee   : > { %p2036_p13 = scmp.lt.s32.totalorder %s2034_s14, %s2030_s23 }
 0x4ef   : > { %p2032_p10 = pnand %p2031_p9, %p2259_p3 }
 0x4f0   : > { %p2037_p0 = por %p2036_p13, %p2035_p12 }
 0x4f1   : > { %p2033_p11 = pneg %p2032_p10 }
 0x4f3   : > { %p2038_p1 = pnand %p2037_p0, %p2033_p11 }
 0x4f5   : > { %2041 = shalt.err (!%p2038_p1)
}
 0x4f6   : > { %s2131_s2 = smov 128   ;;  %s2132_s3 = smov 8  }
 0x4f7   : > { %1881 = dma.vmem_to_hbm [thread:$0]  (%p2259_p3), %s2668_s21, 256, %s2673_s0, %s2638_s18, %s2131_s2, %s2131_s2, %s2132_s3  }
 0x4f8 PF: > { %p1887_p2 = scmp.ge.s32.totalorder %s2108_s20, 2  ;;  %s1581_s28 = sand.u32 1, %s2080_s29  }
 0x4f9   : > { %s1582_s17 = scalar_lea.sflag [#allocation6], %s1581_s28 }
 0x4fa   : > { %p1884_p4 = pnand %p1887_p2, %p2268_p8 }
 0x4fc   : > { %p1885_p5 = pneg %p1884_p4 }
 0x4fe   : > { %2075 = dma.done.wait (%p1885_p5), %s1582_s17, 256  }
 0x4ff   : > { %2077 = vsyncadd (%p1885_p5), %s1582_s17, 4294967040  ;;  %s28_s20 = sadd.s32 1, %s2108_s20   ;;  %s2778_s22 = sld [smem:[#allocation12_spill]] }
 0x500   : > { %p25_p6 = scmp.ge.s32.totalorder %s28_s20, 6   ;;  %s2779_s16 = sld [smem:[#allocation8_spill]] }
 0x501   : > { %s2780_s17 = sld [smem:[#allocation9_spill]]  ;;  %s2783_s29 = smov %s2084_s30 }
 0x502   : > { %s2781_s18 = sld [smem:[#allocation10_spill]]  ;;  %s2784_s30 = smov %s2088_s15 }
 0x503   : > { %s2782_s19 = sld [smem:[#allocation11_spill]]  ;;  %27 = sbr.rel (!%p25_p6) target bundleno = 11 (0xb), region = 276 }
 0x505   : > { %s2785_s15 = smov %s2778_s22 }
 0x508   :  { %1587 = vsyncpa [#allocation6], 1 }
 0x509   :  { %1589 = vsyncpa [#allocation6 + $0x1], 1 }

</bundles_post_ra>
